<compile_context>
chip_gen: v7x
topology: tpu7x:2x2x1
jax: 0.10.0
libtpu: 0.0.40
codegen_flags: <defaults>
</compile_context>

<pallas_src>
import functools

import jax
import jax.numpy as jnp
from jax.experimental import pallas as pl
from jax.experimental.pallas import tpu as pltpu

# ----------------------------- configuration -------------------------------
PRED_OFFSET = 3
INPUT_SIZE = 4
OUTPUT_SIZE = 2
SEQ_LENGTH = 8
SECTORS_LIST = (0, 0, 1, 1)       # sector id per input variable
TRG_SECTORS = (0, 1)              # sector id per output variable
NUM_SECTORS = 2
EMB_TIME = 11
EMB_VAR = 10
EMB_SECTOR = 10
EMB = 1 + EMB_TIME + EMB_VAR + EMB_SECTOR          # = 32 == s_qkv
HIDDEN = 2 * EMB                                   # FFN hidden width
T_TRG_TIME = SEQ_LENGTH + PRED_OFFSET - 1          # 10
TS = SEQ_LENGTH * INPUT_SIZE                       # 32 source tokens / batch
TT = T_TRG_TIME * OUTPUT_SIZE                      # 20 target tokens / batch
BATCH = 2
NEG_INF = -1e30

# TODO(synk): datetime_index-driven calendar features are replaced by a learned
# per-position time embedding (the original Encoder/Decoder bodies were not given).


# ----------------------------- kernel helpers -------------------------------
def _layer_norm(x, g, b, eps=1e-5):
    mu = jnp.mean(x, axis=-1, keepdims=True)
    var = jnp.mean((x - mu) ** 2, axis=-1, keepdims=True)
    return (x - mu) * jax.lax.rsqrt(var + eps) * g + b


def _attn(q, k, v, bias):
    """Softmax attention with a precomputed additive mask (0 / NEG_INF).

    The 1/sqrt(d) scale is already folded into the query projection weights
    (done once at pack time), so scores are just q @ k.T + bias."""
    s = jnp.dot(q, k.T, preferred_element_type=jnp.float32) + bias
    s = s - jnp.max(s, axis=-1, keepdims=True)
    p = jnp.exp(s)
    p = p * pl.reciprocal(jnp.sum(p, axis=-1, keepdims=True), approx=True)
    return jnp.dot(p, v, preferred_element_type=jnp.float32)


# ----------------------------- fused Pallas kernel ---------------------------
# packed-vector rows (width HIDDEN, narrow entries zero padded):
#  0 enc_ln1_g  1 enc_ln1_b  2 enc_ln2_g  3 enc_ln2_b  4 enc_ff_b1  5 enc_ff_b2
#  6 dec_ln1_g  7 dec_ln1_b  8 dec_ln2_g  9 dec_ln2_b 10 dec_ln3_g 11 dec_ln3_b
# 12 dec_ff_b1 13 dec_ff_b2
def spacetimeformer_kernel(src_ref, trg_ref, enc_bias_ref, dec_bias_ref,
                           cross_bias_ref, wqkvo_ref, ffw1_ref, ffw2_ref,
                           vec_ref, out_ref):
    x = src_ref[...]                 # (B*TS, EMB)   batch folded into tokens
    y = trg_ref[...]                 # (B*TT, EMB)
    vecs = vec_ref[...]              # (14, HIDDEN)

    # ------------------------------ encoder layer ----------------------------
    w = wqkvo_ref[0]                                            # (EMB, 4*EMB)
    qkv = jnp.dot(x, w[:, :3 * EMB], preferred_element_type=jnp.float32)
    a = _attn(qkv[:, :EMB], qkv[:, EMB:2 * EMB], qkv[:, 2 * EMB:],
              enc_bias_ref[...])
    a = jnp.dot(a, w[:, 3 * EMB:], preferred_element_type=jnp.float32)
    h = _layer_norm(x + a, vecs[0:1, :EMB], vecs[1:2, :EMB])    # post-LN
    f = jnp.maximum(
        jnp.dot(h, ffw1_ref[0], preferred_element_type=jnp.float32)
        + vecs[4:5, :], 0.0)
    f = jnp.dot(f, ffw2_ref[0], preferred_element_type=jnp.float32) + vecs[5:6, :EMB]
    mem = _layer_norm(h + f, vecs[2:3, :EMB], vecs[3:4, :EMB])  # encoder memory

    # ------------------------------ decoder layer ----------------------------
    # masked (time-causal, batch-block-diagonal) self-attention
    ws = wqkvo_ref[1]
    qkv = jnp.dot(y, ws[:, :3 * EMB], preferred_element_type=jnp.float32)
    a = _attn(qkv[:, :EMB], qkv[:, EMB:2 * EMB], qkv[:, 2 * EMB:],
              dec_bias_ref[...])
    a = jnp.dot(a, ws[:, 3 * EMB:], preferred_element_type=jnp.float32)
    h = _layer_norm(y + a, vecs[6:7, :EMB], vecs[7:8, :EMB])

    # cross-attention over encoder memory (batch-block-diagonal)
    wc = wqkvo_ref[2]
    q2 = jnp.dot(h, wc[:, :EMB], preferred_element_type=jnp.float32)
    kv2 = jnp.dot(mem, wc[:, EMB:3 * EMB], preferred_element_type=jnp.float32)
    a2 = _attn(q2, kv2[:, :EMB], kv2[:, EMB:], cross_bias_ref[...])
    a2 = jnp.dot(a2, wc[:, 3 * EMB:], preferred_element_type=jnp.float32)
    h2 = _layer_norm(h + a2, vecs[8:9, :EMB], vecs[9:10, :EMB])

    # feed-forward
    f = jnp.maximum(
        jnp.dot(h2, ffw1_ref[1], preferred_element_type=jnp.float32)
        + vecs[12:13, :], 0.0)
    f = jnp.dot(f, ffw2_ref[1], preferred_element_type=jnp.float32) + vecs[13:14, :EMB]

    # lane-dense store of the decoder hidden state; scalar head runs in JAX.
    out_ref[...] = _layer_norm(h2 + f, vecs[10:11, :EMB], vecs[11:12, :EMB])


# ----------------------------- pallas_call glue ------------------------------
def _const_spec(shape):
    nd = len(shape)
    return pl.BlockSpec(shape, lambda i, _nd=nd: (0,) * _nd)


def run_model(src_tok, trg_tok, enc_bias, dec_bias, cross_bias,
              wqkvo, ffw1, ffw2, vecs):
    args = (src_tok, trg_tok, enc_bias, dec_bias, cross_bias,
            wqkvo, ffw1, ffw2, vecs)
    n_trg = trg_tok.shape[0]
    return pl.pallas_call(
        spacetimeformer_kernel,
        out_shape=jax.ShapeDtypeStruct((n_trg, EMB), jnp.float32),
        grid_spec=pltpu.PrefetchScalarGridSpec(
            num_scalar_prefetch=0,
            grid=(1,),
            in_specs=[_const_spec(a.shape) for a in args],
            out_specs=pl.BlockSpec((n_trg, EMB), lambda i: (0, 0))),
        compiler_params=pltpu.CompilerParams(
            dimension_semantics=("arbitrary",)),
    )(*args)


# --------------------------- embedding & masks (plain JAX glue) --------------
def build_tokens(values, time_emb, var_emb, sector_emb, sector_ids):
    """values: [B, V, T] -> spacetime tokens [B*V*T, EMB]; token = v*T + t."""
    bsz, n_var, n_t = values.shape
    val = values.reshape(bsz, n_var * n_t, 1)
    t_part = jnp.tile(time_emb, (n_var, 1))                        # (V*T, Et)
    v_part = jnp.repeat(var_emb, n_t, axis=0)                      # (V*T, Ev)
    s_part = jnp.repeat(sector_emb[jnp.asarray(sector_ids)], n_t, axis=0)
    static = jnp.concatenate([t_part, v_part, s_part], axis=-1)    # (V*T, EMB-1)
    static = jnp.broadcast_to(static[None], (bsz, n_var * n_t, EMB - 1))
    tok = jnp.concatenate([val, static], axis=-1).astype(jnp.float32)
    return tok.reshape(bsz * n_var * n_t, EMB)                     # batch folded


def build_attn_biases(bsz):
    """Additive masks (0 keep / NEG_INF drop) for batch-folded attention."""
    src_b = jnp.arange(bsz * TS, dtype=jnp.int32) // TS
    trg_i = jnp.arange(bsz * TT, dtype=jnp.int32)
    trg_b = trg_i // TT
    trg_t = (trg_i % TT) % T_TRG_TIME          # token idx within batch = v*T + t
    # encoder self-attn: block-diagonal over batch
    enc_keep = src_b[:, None] == src_b[None, :]
    # decoder self-attn: same batch AND key time <= query time
    dec_keep = (trg_b[:, None] == trg_b[None, :]) & (trg_t[None, :] <= trg_t[:, None])
    # cross-attn: same batch
    cross_keep = trg_b[:, None] == src_b[None, :]
    to_bias = lambda keep: jnp.where(keep, 0.0, NEG_INF).astype(jnp.float32)
    return to_bias(enc_keep), to_bias(dec_keep), to_bias(cross_keep)


def spacetimeformer_forward(params, source, target):
    """source: [B, input_size, seq_length]; target: [B, output_size, T_trg_time].
    Returns [B, T_trg_time, output_size]."""
    bsz = source.shape[0]
    src_tok = build_tokens(source, params["time_emb_src"], params["var_emb_src"],
                           params["sector_emb"], SECTORS_LIST)       # (B*TS, EMB)
    trg_tok = build_tokens(target, params["time_emb_trg"], params["var_emb_trg"],
                           params["sector_emb"], TRG_SECTORS)        # (B*TT, EMB)
    enc_bias, dec_bias, cross_bias = build_attn_biases(bsz)

    dec_h = run_model(src_tok, trg_tok, enc_bias, dec_bias, cross_bias,
                      params["wqkvo"], params["ffw1"], params["ffw2"],
                      params["vecs"])                                # (B*TT, EMB)

    # tiny scalar output head (lane-dense kernel store; head stays in XLA)
    out = dec_h @ params["dec_proj_w"] + params["dec_proj_b"]        # (B*TT, 1)
    out = out.reshape(bsz, OUTPUT_SIZE, T_TRG_TIME)                  # token = v*T + t
    return jnp.transpose(out, (0, 2, 1))                             # [B, T, out_size]


# ------------------------------- parameters ----------------------------------
def init_raw_params(key):
    names_shapes = {
        # embeddings
        "time_emb_src": (SEQ_LENGTH, EMB_TIME),
        "time_emb_trg": (T_TRG_TIME, EMB_TIME),
        "var_emb_src": (INPUT_SIZE, EMB_VAR),
        "var_emb_trg": (OUTPUT_SIZE, EMB_VAR),
        "sector_emb": (NUM_SECTORS, EMB_SECTOR),
        # encoder layer
        "enc_wq": (EMB, EMB), "enc_wk": (EMB, EMB),
        "enc_wv": (EMB, EMB), "enc_wo": (EMB, EMB),
        "enc_ff_w1": (EMB, HIDDEN), "enc_ff_b1": (1, HIDDEN),
        "enc_ff_w2": (HIDDEN, EMB), "enc_ff_b2": (1, EMB),
        # decoder layer
        "dec_sq": (EMB, EMB), "dec_sk": (EMB, EMB),
        "dec_sv": (EMB, EMB), "dec_so": (EMB, EMB),
        "dec_cq": (EMB, EMB), "dec_ck": (EMB, EMB),
        "dec_cv": (EMB, EMB), "dec_co": (EMB, EMB),
        "dec_ff_w1": (EMB, HIDDEN), "dec_ff_b1": (1, HIDDEN),
        "dec_ff_w2": (HIDDEN, EMB), "dec_ff_b2": (1, EMB),
        "dec_proj_w": (EMB, 1), "dec_proj_b": (1, 1),
    }
    keys = jax.random.split(key, len(names_shapes))
    params = {}
    for (name, shape), k in zip(names_shapes.items(), keys):
        if name.endswith("_b1") or name.endswith("_b2") or name.endswith("_b"):
            params[name] = jnp.zeros(shape, jnp.float32)
        else:
            fan_in = shape[0]
            params[name] = (jax.random.normal(k, shape, jnp.float32)
                            / jnp.sqrt(jnp.float32(fan_in)))
    # layernorm scale/shift
    for pre in ["enc_ln1", "enc_ln2", "dec_ln1", "dec_ln2", "dec_ln3"]:
        params[pre + "_g"] = jnp.ones((1, EMB), jnp.float32)
        params[pre + "_b"] = jnp.zeros((1, EMB), jnp.float32)
    return params


def pack_params(p):
    """Pack per-layer weights into few kernel operands (done once, host side).

    The 1/sqrt(d) attention scale is folded into the Q projection weights so
    the kernel never multiplies full score matrices by a scalar."""
    scale = 1.0 / (float(EMB) ** 0.5)
    wqkvo = jnp.stack([
        jnp.concatenate([p["enc_wq"] * scale, p["enc_wk"],
                         p["enc_wv"], p["enc_wo"]], axis=1),
        jnp.concatenate([p["dec_sq"] * scale, p["dec_sk"],
                         p["dec_sv"], p["dec_so"]], axis=1),
        jnp.concatenate([p["dec_cq"] * scale, p["dec_ck"],
                         p["dec_cv"], p["dec_co"]], axis=1),
    ])                                                       # (3, EMB, 4*EMB)
    ffw1 = jnp.stack([p["enc_ff_w1"], p["dec_ff_w1"]])       # (2, EMB, HIDDEN)
    ffw2 = jnp.stack([p["enc_ff_w2"], p["dec_ff_w2"]])       # (2, HIDDEN, EMB)

    def row(v):
        v = v.reshape(-1)
        return jnp.pad(v, (0, HIDDEN - v.shape[0]))

    vecs = jnp.stack([
        row(p["enc_ln1_g"]), row(p["enc_ln1_b"]),
        row(p["enc_ln2_g"]), row(p["enc_ln2_b"]),
        row(p["enc_ff_b1"]), row(p["enc_ff_b2"]),
        row(p["dec_ln1_g"]), row(p["dec_ln1_b"]),
        row(p["dec_ln2_g"]), row(p["dec_ln2_b"]),
        row(p["dec_ln3_g"]), row(p["dec_ln3_b"]),
        row(p["dec_ff_b1"]), row(p["dec_ff_b2"]),
    ])                                                       # (14, HIDDEN)

    packed = {
        "wqkvo": wqkvo, "ffw1": ffw1, "ffw2": ffw2, "vecs": vecs,
        "dec_proj_w": p["dec_proj_w"], "dec_proj_b": p["dec_proj_b"],
        "time_emb_src": p["time_emb_src"], "time_emb_trg": p["time_emb_trg"],
        "var_emb_src": p["var_emb_src"], "var_emb_trg": p["var_emb_trg"],
        "sector_emb": p["sector_emb"],
    }
    return packed


# --------------------------------- main ---------------------------------------
if __name__ == "__main__":
    key = jax.random.PRNGKey(0)
    k_src, k_trg = jax.random.split(key)
    source = jax.random.normal(k_src, (BATCH, INPUT_SIZE, SEQ_LENGTH), jnp.float32)
    target = jax.random.normal(k_trg, (BATCH, OUTPUT_SIZE, T_TRG_TIME), jnp.float32)

    params = pack_params(init_raw_params(jax.random.PRNGKey(42)))

    fwd = jax.jit(functools.partial(spacetimeformer_forward, params))
    out = fwd(source, target)
    out = jax.block_until_ready(out)

    assert out.shape == (BATCH, T_TRG_TIME, OUTPUT_SIZE), out.shape
    assert bool(jnp.all(jnp.isfinite(out)))
    print("KERNEL_OK")
</pallas_src>

<mosaic_0001>
module attributes {stable_mosaic.version = 11 : i64} {
  func.func @spacetimeformer_kernel(%arg0: i32, %arg1: memref<64x32xf32, #tpu.memory_space<vmem>>, %arg2: memref<40x32xf32, #tpu.memory_space<vmem>>, %arg3: memref<64x64xf32, #tpu.memory_space<vmem>>, %arg4: memref<40x40xf32, #tpu.memory_space<vmem>>, %arg5: memref<40x64xf32, #tpu.memory_space<vmem>>, %arg6: memref<3x32x128xf32, #tpu.memory_space<vmem>>, %arg7: memref<2x32x64xf32, #tpu.memory_space<vmem>>, %arg8: memref<2x64x32xf32, #tpu.memory_space<vmem>>, %arg9: memref<14x64xf32, #tpu.memory_space<vmem>>, %arg10: memref<40x32xf32, #tpu.memory_space<vmem>>) attributes {dimension_semantics = [#tpu.dimension_semantics<arbitrary>], iteration_bounds = array<i64: 1>, scalar_prefetch = 0 : i64, scratch_operands = 0 : i64, tpu.core_type = #tpu.core_type<tc>, window_params = [{pipeline_mode = #tpu.pipeline_mode<synchronous>, transform_indices = @transform_0, window_bounds = array<i64: 64, 32>}, {pipeline_mode = #tpu.pipeline_mode<synchronous>, transform_indices = @transform_1, window_bounds = array<i64: 40, 32>}, {pipeline_mode = #tpu.pipeline_mode<synchronous>, transform_indices = @transform_2, window_bounds = array<i64: 64, 64>}, {pipeline_mode = #tpu.pipeline_mode<synchronous>, transform_indices = @transform_3, window_bounds = array<i64: 40, 40>}, {pipeline_mode = #tpu.pipeline_mode<synchronous>, transform_indices = @transform_4, window_bounds = array<i64: 40, 64>}, {pipeline_mode = #tpu.pipeline_mode<synchronous>, transform_indices = @transform_5, window_bounds = array<i64: 3, 32, 128>}, {pipeline_mode = #tpu.pipeline_mode<synchronous>, transform_indices = @transform_6, window_bounds = array<i64: 2, 32, 64>}, {pipeline_mode = #tpu.pipeline_mode<synchronous>, transform_indices = @transform_7, window_bounds = array<i64: 2, 64, 32>}, {pipeline_mode = #tpu.pipeline_mode<synchronous>, transform_indices = @transform_8, window_bounds = array<i64: 14, 64>}, {pipeline_mode = #tpu.pipeline_mode<synchronous>, transform_indices = @transform_9, window_bounds = array<i64: 40, 32>}]} {
    %c0 = arith.constant 0 : index
    %c0_0 = arith.constant 0 : index
    %0 = vector.load %arg1[%c0, %c0_0] : memref<64x32xf32, #tpu.memory_space<vmem>>, vector<64x32xf32>
    %c0_1 = arith.constant 0 : index
    %c0_2 = arith.constant 0 : index
    %1 = vector.load %arg2[%c0_1, %c0_2] : memref<40x32xf32, #tpu.memory_space<vmem>>, vector<40x32xf32>
    %c0_3 = arith.constant 0 : index
    %c0_4 = arith.constant 0 : index
    %2 = vector.load %arg9[%c0_3, %c0_4] : memref<14x64xf32, #tpu.memory_space<vmem>>, vector<14x64xf32>
    %c0_5 = arith.constant 0 : index
    %c0_6 = arith.constant 0 : index
    %c0_7 = arith.constant 0 : index
    %3 = vector.load %arg6[%c0_5, %c0_6, %c0_7] : memref<3x32x128xf32, #tpu.memory_space<vmem>>, vector<1x32x128xf32>
    %4 = vector.shape_cast %3 : vector<1x32x128xf32> to vector<32x128xf32>
    %5 = vector.extract_strided_slice %4 {offsets = [0, 0], sizes = [32, 96], strides = [1, 1]} : vector<32x128xf32> to vector<32x96xf32>
    %cst = arith.constant dense<0.000000e+00> : vector<64x96xf32>
    %6 = tpu.matmul %0, %5, %cst {dimension_numbers = #tpu.dot_dimension_numbers<[1], [0], [0], [1], [0, 0, 1, 1], [], []>} : vector<64x32xf32>, vector<32x96xf32>, vector<64x96xf32> -> vector<64x96xf32>
    %7 = vector.extract_strided_slice %6 {offsets = [0, 0], sizes = [64, 32], strides = [1, 1]} : vector<64x96xf32> to vector<64x32xf32>
    %8 = vector.extract_strided_slice %6 {offsets = [0, 32], sizes = [64, 32], strides = [1, 1]} : vector<64x96xf32> to vector<64x32xf32>
    %9 = vector.extract_strided_slice %6 {offsets = [0, 64], sizes = [64, 32], strides = [1, 1]} : vector<64x96xf32> to vector<64x32xf32>
    %c0_8 = arith.constant 0 : index
    %c0_9 = arith.constant 0 : index
    %10 = vector.load %arg3[%c0_8, %c0_9] : memref<64x64xf32, #tpu.memory_space<vmem>>, vector<64x64xf32>
    %11 = tpu.transpose %8, [1, 0] : vector<64x32xf32> -> vector<32x64xf32>
    %cst_10 = arith.constant dense<0.000000e+00> : vector<64x64xf32>
    %12 = tpu.matmul %7, %11, %cst_10 {dimension_numbers = #tpu.dot_dimension_numbers<[1], [0], [0], [1], [0, 0, 1, 1], [], []>} : vector<64x32xf32>, vector<32x64xf32>, vector<64x64xf32> -> vector<64x64xf32>
    %13 = arith.addf %12, %10 : vector<64x64xf32>
    %cst_11 = arith.constant dense<0xFF800000> : vector<64xf32>
    %14 = vector.multi_reduction <maximumf>, %13, %cst_11 [1] : vector<64x64xf32> to vector<64xf32>
    %15 = vector.shape_cast %14 : vector<64xf32> to vector<64x1xf32>
    %16 = vector.broadcast %15 : vector<64x1xf32> to vector<64x64xf32>
    %17 = arith.subf %13, %16 : vector<64x64xf32>
    %18 = math.exp %17 : vector<64x64xf32>
    %cst_12 = arith.constant dense<0.000000e+00> : vector<64xf32>
    %19 = vector.multi_reduction <add>, %18, %cst_12 [1] : vector<64x64xf32> to vector<64xf32>
    %20 = vector.shape_cast %19 : vector<64xf32> to vector<64x1xf32>
    %21 = tpu.reciprocal %20 {approx = true} : vector<64x1xf32> -> vector<64x1xf32>
    %22 = vector.broadcast %21 : vector<64x1xf32> to vector<64x64xf32>
    %23 = arith.mulf %18, %22 : vector<64x64xf32>
    %cst_13 = arith.constant dense<0.000000e+00> : vector<64x32xf32>
    %24 = tpu.matmul %23, %9, %cst_13 {dimension_numbers = #tpu.dot_dimension_numbers<[1], [0], [0], [1], [0, 0, 1, 1], [], []>} : vector<64x64xf32>, vector<64x32xf32>, vector<64x32xf32> -> vector<64x32xf32>
    %25 = vector.extract_strided_slice %4 {offsets = [0, 96], sizes = [32, 32], strides = [1, 1]} : vector<32x128xf32> to vector<32x32xf32>
    %cst_14 = arith.constant dense<0.000000e+00> : vector<64x32xf32>
    %26 = tpu.matmul %24, %25, %cst_14 {dimension_numbers = #tpu.dot_dimension_numbers<[1], [0], [0], [1], [0, 0, 1, 1], [], []>} : vector<64x32xf32>, vector<32x32xf32>, vector<64x32xf32> -> vector<64x32xf32>
    %27 = arith.addf %0, %26 : vector<64x32xf32>
    %28 = vector.extract_strided_slice %2 {offsets = [0, 0], sizes = [1, 32], strides = [1, 1]} : vector<14x64xf32> to vector<1x32xf32>
    %29 = vector.extract_strided_slice %2 {offsets = [1, 0], sizes = [1, 32], strides = [1, 1]} : vector<14x64xf32> to vector<1x32xf32>
    %cst_15 = arith.constant dense<0.000000e+00> : vector<64xf32>
    %30 = vector.multi_reduction <add>, %27, %cst_15 [1] : vector<64x32xf32> to vector<64xf32>
    %31 = vector.shape_cast %30 : vector<64xf32> to vector<64x1xf32>
    %cst_16 = arith.constant 3.200000e+01 : f32
    %32 = vector.broadcast %cst_16 : f32 to vector<64x1xf32>
    %33 = arith.divf %31, %32 : vector<64x1xf32>
    %34 = vector.broadcast %33 : vector<64x1xf32> to vector<64x32xf32>
    %35 = arith.subf %27, %34 : vector<64x32xf32>
    %36 = arith.mulf %35, %35 : vector<64x32xf32>
    %cst_17 = arith.constant dense<0.000000e+00> : vector<64xf32>
    %37 = vector.multi_reduction <add>, %36, %cst_17 [1] : vector<64x32xf32> to vector<64xf32>
    %38 = vector.shape_cast %37 : vector<64xf32> to vector<64x1xf32>
    %cst_18 = arith.constant 3.200000e+01 : f32
    %39 = vector.broadcast %cst_18 : f32 to vector<64x1xf32>
    %40 = arith.divf %38, %39 : vector<64x1xf32>
    %41 = vector.broadcast %33 : vector<64x1xf32> to vector<64x32xf32>
    %42 = arith.subf %27, %41 : vector<64x32xf32>
    %cst_19 = arith.constant 9.99999974E-6 : f32
    %43 = vector.broadcast %cst_19 : f32 to vector<64x1xf32>
    %44 = arith.addf %40, %43 : vector<64x1xf32>
    %45 = math.rsqrt %44 : vector<64x1xf32>
    %46 = vector.broadcast %45 : vector<64x1xf32> to vector<64x32xf32>
    %47 = arith.mulf %42, %46 : vector<64x32xf32>
    %48 = vector.broadcast %28 : vector<1x32xf32> to vector<64x32xf32>
    %49 = arith.mulf %47, %48 : vector<64x32xf32>
    %50 = vector.broadcast %29 : vector<1x32xf32> to vector<64x32xf32>
    %51 = arith.addf %49, %50 : vector<64x32xf32>
    %c0_20 = arith.constant 0 : index
    %c0_21 = arith.constant 0 : index
    %c0_22 = arith.constant 0 : index
    %52 = vector.load %arg7[%c0_20, %c0_21, %c0_22] : memref<2x32x64xf32, #tpu.memory_space<vmem>>, vector<1x32x64xf32>
    %53 = vector.shape_cast %52 : vector<1x32x64xf32> to vector<32x64xf32>
    %cst_23 = arith.constant dense<0.000000e+00> : vector<64x64xf32>
    %54 = tpu.matmul %51, %53, %cst_23 {dimension_numbers = #tpu.dot_dimension_numbers<[1], [0], [0], [1], [0, 0, 1, 1], [], []>} : vector<64x32xf32>, vector<32x64xf32>, vector<64x64xf32> -> vector<64x64xf32>
    %55 = vector.extract_strided_slice %2 {offsets = [4, 0], sizes = [1, 64], strides = [1, 1]} : vector<14x64xf32> to vector<1x64xf32>
    %56 = vector.broadcast %55 : vector<1x64xf32> to vector<64x64xf32>
    %57 = arith.addf %54, %56 : vector<64x64xf32>
    %cst_24 = arith.constant 0.000000e+00 : f32
    %58 = vector.broadcast %cst_24 : f32 to vector<64x64xf32>
    %59 = arith.maximumf %57, %58 : vector<64x64xf32>
    %c0_25 = arith.constant 0 : index
    %c0_26 = arith.constant 0 : index
    %c0_27 = arith.constant 0 : index
    %60 = vector.load %arg8[%c0_25, %c0_26, %c0_27] : memref<2x64x32xf32, #tpu.memory_space<vmem>>, vector<1x64x32xf32>
    %61 = vector.shape_cast %60 : vector<1x64x32xf32> to vector<64x32xf32>
    %cst_28 = arith.constant dense<0.000000e+00> : vector<64x32xf32>
    %62 = tpu.matmul %59, %61, %cst_28 {dimension_numbers = #tpu.dot_dimension_numbers<[1], [0], [0], [1], [0, 0, 1, 1], [], []>} : vector<64x64xf32>, vector<64x32xf32>, vector<64x32xf32> -> vector<64x32xf32>
    %63 = vector.extract_strided_slice %2 {offsets = [5, 0], sizes = [1, 32], strides = [1, 1]} : vector<14x64xf32> to vector<1x32xf32>
    %64 = vector.broadcast %63 : vector<1x32xf32> to vector<64x32xf32>
    %65 = arith.addf %62, %64 : vector<64x32xf32>
    %66 = arith.addf %51, %65 : vector<64x32xf32>
    %67 = vector.extract_strided_slice %2 {offsets = [2, 0], sizes = [1, 32], strides = [1, 1]} : vector<14x64xf32> to vector<1x32xf32>
    %68 = vector.extract_strided_slice %2 {offsets = [3, 0], sizes = [1, 32], strides = [1, 1]} : vector<14x64xf32> to vector<1x32xf32>
    %cst_29 = arith.constant dense<0.000000e+00> : vector<64xf32>
    %69 = vector.multi_reduction <add>, %66, %cst_29 [1] : vector<64x32xf32> to vector<64xf32>
    %70 = vector.shape_cast %69 : vector<64xf32> to vector<64x1xf32>
    %cst_30 = arith.constant 3.200000e+01 : f32
    %71 = vector.broadcast %cst_30 : f32 to vector<64x1xf32>
    %72 = arith.divf %70, %71 : vector<64x1xf32>
    %73 = vector.broadcast %72 : vector<64x1xf32> to vector<64x32xf32>
    %74 = arith.subf %66, %73 : vector<64x32xf32>
    %75 = arith.mulf %74, %74 : vector<64x32xf32>
    %cst_31 = arith.constant dense<0.000000e+00> : vector<64xf32>
    %76 = vector.multi_reduction <add>, %75, %cst_31 [1] : vector<64x32xf32> to vector<64xf32>
    %77 = vector.shape_cast %76 : vector<64xf32> to vector<64x1xf32>
    %cst_32 = arith.constant 3.200000e+01 : f32
    %78 = vector.broadcast %cst_32 : f32 to vector<64x1xf32>
    %79 = arith.divf %77, %78 : vector<64x1xf32>
    %80 = vector.broadcast %72 : vector<64x1xf32> to vector<64x32xf32>
    %81 = arith.subf %66, %80 : vector<64x32xf32>
    %cst_33 = arith.constant 9.99999974E-6 : f32
    %82 = vector.broadcast %cst_33 : f32 to vector<64x1xf32>
    %83 = arith.addf %79, %82 : vector<64x1xf32>
    %84 = math.rsqrt %83 : vector<64x1xf32>
    %85 = vector.broadcast %84 : vector<64x1xf32> to vector<64x32xf32>
    %86 = arith.mulf %81, %85 : vector<64x32xf32>
    %87 = vector.broadcast %67 : vector<1x32xf32> to vector<64x32xf32>
    %88 = arith.mulf %86, %87 : vector<64x32xf32>
    %89 = vector.broadcast %68 : vector<1x32xf32> to vector<64x32xf32>
    %90 = arith.addf %88, %89 : vector<64x32xf32>
    %c1 = arith.constant 1 : index
    %c0_34 = arith.constant 0 : index
    %c0_35 = arith.constant 0 : index
    %91 = vector.load %arg6[%c1, %c0_34, %c0_35] : memref<3x32x128xf32, #tpu.memory_space<vmem>>, vector<1x32x128xf32>
    %92 = vector.shape_cast %91 : vector<1x32x128xf32> to vector<32x128xf32>
    %93 = vector.extract_strided_slice %92 {offsets = [0, 0], sizes = [32, 96], strides = [1, 1]} : vector<32x128xf32> to vector<32x96xf32>
    %cst_36 = arith.constant dense<0.000000e+00> : vector<40x96xf32>
    %94 = tpu.matmul %1, %93, %cst_36 {dimension_numbers = #tpu.dot_dimension_numbers<[1], [0], [0], [1], [0, 0, 1, 1], [], []>} : vector<40x32xf32>, vector<32x96xf32>, vector<40x96xf32> -> vector<40x96xf32>
    %95 = vector.extract_strided_slice %94 {offsets = [0, 0], sizes = [40, 32], strides = [1, 1]} : vector<40x96xf32> to vector<40x32xf32>
    %96 = vector.extract_strided_slice %94 {offsets = [0, 32], sizes = [40, 32], strides = [1, 1]} : vector<40x96xf32> to vector<40x32xf32>
    %97 = vector.extract_strided_slice %94 {offsets = [0, 64], sizes = [40, 32], strides = [1, 1]} : vector<40x96xf32> to vector<40x32xf32>
    %c0_37 = arith.constant 0 : index
    %c0_38 = arith.constant 0 : index
    %98 = vector.load %arg4[%c0_37, %c0_38] : memref<40x40xf32, #tpu.memory_space<vmem>>, vector<40x40xf32>
    %99 = tpu.transpose %96, [1, 0] : vector<40x32xf32> -> vector<32x40xf32>
    %cst_39 = arith.constant dense<0.000000e+00> : vector<40x40xf32>
    %100 = tpu.matmul %95, %99, %cst_39 {dimension_numbers = #tpu.dot_dimension_numbers<[1], [0], [0], [1], [0, 0, 1, 1], [], []>} : vector<40x32xf32>, vector<32x40xf32>, vector<40x40xf32> -> vector<40x40xf32>
    %101 = arith.addf %100, %98 : vector<40x40xf32>
    %cst_40 = arith.constant dense<0xFF800000> : vector<40xf32>
    %102 = vector.multi_reduction <maximumf>, %101, %cst_40 [1] : vector<40x40xf32> to vector<40xf32>
    %103 = vector.shape_cast %102 : vector<40xf32> to vector<40x1xf32>
    %104 = vector.broadcast %103 : vector<40x1xf32> to vector<40x40xf32>
    %105 = arith.subf %101, %104 : vector<40x40xf32>
    %106 = math.exp %105 : vector<40x40xf32>
    %cst_41 = arith.constant dense<0.000000e+00> : vector<40xf32>
    %107 = vector.multi_reduction <add>, %106, %cst_41 [1] : vector<40x40xf32> to vector<40xf32>
    %108 = vector.shape_cast %107 : vector<40xf32> to vector<40x1xf32>
    %109 = tpu.reciprocal %108 {approx = true} : vector<40x1xf32> -> vector<40x1xf32>
    %110 = vector.broadcast %109 : vector<40x1xf32> to vector<40x40xf32>
    %111 = arith.mulf %106, %110 : vector<40x40xf32>
    %cst_42 = arith.constant dense<0.000000e+00> : vector<40x32xf32>
    %112 = tpu.matmul %111, %97, %cst_42 {dimension_numbers = #tpu.dot_dimension_numbers<[1], [0], [0], [1], [0, 0, 1, 1], [], []>} : vector<40x40xf32>, vector<40x32xf32>, vector<40x32xf32> -> vector<40x32xf32>
    %113 = vector.extract_strided_slice %92 {offsets = [0, 96], sizes = [32, 32], strides = [1, 1]} : vector<32x128xf32> to vector<32x32xf32>
    %cst_43 = arith.constant dense<0.000000e+00> : vector<40x32xf32>
    %114 = tpu.matmul %112, %113, %cst_43 {dimension_numbers = #tpu.dot_dimension_numbers<[1], [0], [0], [1], [0, 0, 1, 1], [], []>} : vector<40x32xf32>, vector<32x32xf32>, vector<40x32xf32> -> vector<40x32xf32>
    %115 = arith.addf %1, %114 : vector<40x32xf32>
    %116 = vector.extract_strided_slice %2 {offsets = [6, 0], sizes = [1, 32], strides = [1, 1]} : vector<14x64xf32> to vector<1x32xf32>
    %117 = vector.extract_strided_slice %2 {offsets = [7, 0], sizes = [1, 32], strides = [1, 1]} : vector<14x64xf32> to vector<1x32xf32>
    %cst_44 = arith.constant dense<0.000000e+00> : vector<40xf32>
    %118 = vector.multi_reduction <add>, %115, %cst_44 [1] : vector<40x32xf32> to vector<40xf32>
    %119 = vector.shape_cast %118 : vector<40xf32> to vector<40x1xf32>
    %cst_45 = arith.constant 3.200000e+01 : f32
    %120 = vector.broadcast %cst_45 : f32 to vector<40x1xf32>
    %121 = arith.divf %119, %120 : vector<40x1xf32>
    %122 = vector.broadcast %121 : vector<40x1xf32> to vector<40x32xf32>
    %123 = arith.subf %115, %122 : vector<40x32xf32>
    %124 = arith.mulf %123, %123 : vector<40x32xf32>
    %cst_46 = arith.constant dense<0.000000e+00> : vector<40xf32>
    %125 = vector.multi_reduction <add>, %124, %cst_46 [1] : vector<40x32xf32> to vector<40xf32>
    %126 = vector.shape_cast %125 : vector<40xf32> to vector<40x1xf32>
    %cst_47 = arith.constant 3.200000e+01 : f32
    %127 = vector.broadcast %cst_47 : f32 to vector<40x1xf32>
    %128 = arith.divf %126, %127 : vector<40x1xf32>
    %129 = vector.broadcast %121 : vector<40x1xf32> to vector<40x32xf32>
    %130 = arith.subf %115, %129 : vector<40x32xf32>
    %cst_48 = arith.constant 9.99999974E-6 : f32
    %131 = vector.broadcast %cst_48 : f32 to vector<40x1xf32>
    %132 = arith.addf %128, %131 : vector<40x1xf32>
    %133 = math.rsqrt %132 : vector<40x1xf32>
    %134 = vector.broadcast %133 : vector<40x1xf32> to vector<40x32xf32>
    %135 = arith.mulf %130, %134 : vector<40x32xf32>
    %136 = vector.broadcast %116 : vector<1x32xf32> to vector<40x32xf32>
    %137 = arith.mulf %135, %136 : vector<40x32xf32>
    %138 = vector.broadcast %117 : vector<1x32xf32> to vector<40x32xf32>
    %139 = arith.addf %137, %138 : vector<40x32xf32>
    %c2 = arith.constant 2 : index
    %c0_49 = arith.constant 0 : index
    %c0_50 = arith.constant 0 : index
    %140 = vector.load %arg6[%c2, %c0_49, %c0_50] : memref<3x32x128xf32, #tpu.memory_space<vmem>>, vector<1x32x128xf32>
    %141 = vector.shape_cast %140 : vector<1x32x128xf32> to vector<32x128xf32>
    %142 = vector.extract_strided_slice %141 {offsets = [0, 0], sizes = [32, 32], strides = [1, 1]} : vector<32x128xf32> to vector<32x32xf32>
    %cst_51 = arith.constant dense<0.000000e+00> : vector<40x32xf32>
    %143 = tpu.matmul %139, %142, %cst_51 {dimension_numbers = #tpu.dot_dimension_numbers<[1], [0], [0], [1], [0, 0, 1, 1], [], []>} : vector<40x32xf32>, vector<32x32xf32>, vector<40x32xf32> -> vector<40x32xf32>
    %144 = vector.extract_strided_slice %141 {offsets = [0, 32], sizes = [32, 64], strides = [1, 1]} : vector<32x128xf32> to vector<32x64xf32>
    %cst_52 = arith.constant dense<0.000000e+00> : vector<64x64xf32>
    %145 = tpu.matmul %90, %144, %cst_52 {dimension_numbers = #tpu.dot_dimension_numbers<[1], [0], [0], [1], [0, 0, 1, 1], [], []>} : vector<64x32xf32>, vector<32x64xf32>, vector<64x64xf32> -> vector<64x64xf32>
    %146 = vector.extract_strided_slice %145 {offsets = [0, 0], sizes = [64, 32], strides = [1, 1]} : vector<64x64xf32> to vector<64x32xf32>
    %147 = vector.extract_strided_slice %145 {offsets = [0, 32], sizes = [64, 32], strides = [1, 1]} : vector<64x64xf32> to vector<64x32xf32>
    %c0_53 = arith.constant 0 : index
    %c0_54 = arith.constant 0 : index
    %148 = vector.load %arg5[%c0_53, %c0_54] : memref<40x64xf32, #tpu.memory_space<vmem>>, vector<40x64xf32>
    %149 = tpu.transpose %146, [1, 0] : vector<64x32xf32> -> vector<32x64xf32>
    %cst_55 = arith.constant dense<0.000000e+00> : vector<40x64xf32>
    %150 = tpu.matmul %143, %149, %cst_55 {dimension_numbers = #tpu.dot_dimension_numbers<[1], [0], [0], [1], [0, 0, 1, 1], [], []>} : vector<40x32xf32>, vector<32x64xf32>, vector<40x64xf32> -> vector<40x64xf32>
    %151 = arith.addf %150, %148 : vector<40x64xf32>
    %cst_56 = arith.constant dense<0xFF800000> : vector<40xf32>
    %152 = vector.multi_reduction <maximumf>, %151, %cst_56 [1] : vector<40x64xf32> to vector<40xf32>
    %153 = vector.shape_cast %152 : vector<40xf32> to vector<40x1xf32>
    %154 = vector.broadcast %153 : vector<40x1xf32> to vector<40x64xf32>
    %155 = arith.subf %151, %154 : vector<40x64xf32>
    %156 = math.exp %155 : vector<40x64xf32>
    %cst_57 = arith.constant dense<0.000000e+00> : vector<40xf32>
    %157 = vector.multi_reduction <add>, %156, %cst_57 [1] : vector<40x64xf32> to vector<40xf32>
    %158 = vector.shape_cast %157 : vector<40xf32> to vector<40x1xf32>
    %159 = tpu.reciprocal %158 {approx = true} : vector<40x1xf32> -> vector<40x1xf32>
    %160 = vector.broadcast %159 : vector<40x1xf32> to vector<40x64xf32>
    %161 = arith.mulf %156, %160 : vector<40x64xf32>
    %cst_58 = arith.constant dense<0.000000e+00> : vector<40x32xf32>
    %162 = tpu.matmul %161, %147, %cst_58 {dimension_numbers = #tpu.dot_dimension_numbers<[1], [0], [0], [1], [0, 0, 1, 1], [], []>} : vector<40x64xf32>, vector<64x32xf32>, vector<40x32xf32> -> vector<40x32xf32>
    %163 = vector.extract_strided_slice %141 {offsets = [0, 96], sizes = [32, 32], strides = [1, 1]} : vector<32x128xf32> to vector<32x32xf32>
    %cst_59 = arith.constant dense<0.000000e+00> : vector<40x32xf32>
    %164 = tpu.matmul %162, %163, %cst_59 {dimension_numbers = #tpu.dot_dimension_numbers<[1], [0], [0], [1], [0, 0, 1, 1], [], []>} : vector<40x32xf32>, vector<32x32xf32>, vector<40x32xf32> -> vector<40x32xf32>
    %165 = arith.addf %139, %164 : vector<40x32xf32>
    %166 = vector.extract_strided_slice %2 {offsets = [8, 0], sizes = [1, 32], strides = [1, 1]} : vector<14x64xf32> to vector<1x32xf32>
    %167 = vector.extract_strided_slice %2 {offsets = [9, 0], sizes = [1, 32], strides = [1, 1]} : vector<14x64xf32> to vector<1x32xf32>
    %cst_60 = arith.constant dense<0.000000e+00> : vector<40xf32>
    %168 = vector.multi_reduction <add>, %165, %cst_60 [1] : vector<40x32xf32> to vector<40xf32>
    %169 = vector.shape_cast %168 : vector<40xf32> to vector<40x1xf32>
    %cst_61 = arith.constant 3.200000e+01 : f32
    %170 = vector.broadcast %cst_61 : f32 to vector<40x1xf32>
    %171 = arith.divf %169, %170 : vector<40x1xf32>
    %172 = vector.broadcast %171 : vector<40x1xf32> to vector<40x32xf32>
    %173 = arith.subf %165, %172 : vector<40x32xf32>
    %174 = arith.mulf %173, %173 : vector<40x32xf32>
    %cst_62 = arith.constant dense<0.000000e+00> : vector<40xf32>
    %175 = vector.multi_reduction <add>, %174, %cst_62 [1] : vector<40x32xf32> to vector<40xf32>
    %176 = vector.shape_cast %175 : vector<40xf32> to vector<40x1xf32>
    %cst_63 = arith.constant 3.200000e+01 : f32
    %177 = vector.broadcast %cst_63 : f32 to vector<40x1xf32>
    %178 = arith.divf %176, %177 : vector<40x1xf32>
    %179 = vector.broadcast %171 : vector<40x1xf32> to vector<40x32xf32>
    %180 = arith.subf %165, %179 : vector<40x32xf32>
    %cst_64 = arith.constant 9.99999974E-6 : f32
    %181 = vector.broadcast %cst_64 : f32 to vector<40x1xf32>
    %182 = arith.addf %178, %181 : vector<40x1xf32>
    %183 = math.rsqrt %182 : vector<40x1xf32>
    %184 = vector.broadcast %183 : vector<40x1xf32> to vector<40x32xf32>
    %185 = arith.mulf %180, %184 : vector<40x32xf32>
    %186 = vector.broadcast %166 : vector<1x32xf32> to vector<40x32xf32>
    %187 = arith.mulf %185, %186 : vector<40x32xf32>
    %188 = vector.broadcast %167 : vector<1x32xf32> to vector<40x32xf32>
    %189 = arith.addf %187, %188 : vector<40x32xf32>
    %c1_65 = arith.constant 1 : index
    %c0_66 = arith.constant 0 : index
    %c0_67 = arith.constant 0 : index
    %190 = vector.load %arg7[%c1_65, %c0_66, %c0_67] : memref<2x32x64xf32, #tpu.memory_space<vmem>>, vector<1x32x64xf32>
    %191 = vector.shape_cast %190 : vector<1x32x64xf32> to vector<32x64xf32>
    %cst_68 = arith.constant dense<0.000000e+00> : vector<40x64xf32>
    %192 = tpu.matmul %189, %191, %cst_68 {dimension_numbers = #tpu.dot_dimension_numbers<[1], [0], [0], [1], [0, 0, 1, 1], [], []>} : vector<40x32xf32>, vector<32x64xf32>, vector<40x64xf32> -> vector<40x64xf32>
    %193 = vector.extract_strided_slice %2 {offsets = [12, 0], sizes = [1, 64], strides = [1, 1]} : vector<14x64xf32> to vector<1x64xf32>
    %194 = vector.broadcast %193 : vector<1x64xf32> to vector<40x64xf32>
    %195 = arith.addf %192, %194 : vector<40x64xf32>
    %cst_69 = arith.constant 0.000000e+00 : f32
    %196 = vector.broadcast %cst_69 : f32 to vector<40x64xf32>
    %197 = arith.maximumf %195, %196 : vector<40x64xf32>
    %c1_70 = arith.constant 1 : index
    %c0_71 = arith.constant 0 : index
    %c0_72 = arith.constant 0 : index
    %198 = vector.load %arg8[%c1_70, %c0_71, %c0_72] : memref<2x64x32xf32, #tpu.memory_space<vmem>>, vector<1x64x32xf32>
    %199 = vector.shape_cast %198 : vector<1x64x32xf32> to vector<64x32xf32>
    %cst_73 = arith.constant dense<0.000000e+00> : vector<40x32xf32>
    %200 = tpu.matmul %197, %199, %cst_73 {dimension_numbers = #tpu.dot_dimension_numbers<[1], [0], [0], [1], [0, 0, 1, 1], [], []>} : vector<40x64xf32>, vector<64x32xf32>, vector<40x32xf32> -> vector<40x32xf32>
    %201 = vector.extract_strided_slice %2 {offsets = [13, 0], sizes = [1, 32], strides = [1, 1]} : vector<14x64xf32> to vector<1x32xf32>
    %202 = vector.broadcast %201 : vector<1x32xf32> to vector<40x32xf32>
    %203 = arith.addf %200, %202 : vector<40x32xf32>
    %204 = arith.addf %189, %203 : vector<40x32xf32>
    %205 = vector.extract_strided_slice %2 {offsets = [10, 0], sizes = [1, 32], strides = [1, 1]} : vector<14x64xf32> to vector<1x32xf32>
    %206 = vector.extract_strided_slice %2 {offsets = [11, 0], sizes = [1, 32], strides = [1, 1]} : vector<14x64xf32> to vector<1x32xf32>
    %cst_74 = arith.constant dense<0.000000e+00> : vector<40xf32>
    %207 = vector.multi_reduction <add>, %204, %cst_74 [1] : vector<40x32xf32> to vector<40xf32>
    %208 = vector.shape_cast %207 : vector<40xf32> to vector<40x1xf32>
    %cst_75 = arith.constant 3.200000e+01 : f32
    %209 = vector.broadcast %cst_75 : f32 to vector<40x1xf32>
    %210 = arith.divf %208, %209 : vector<40x1xf32>
    %211 = vector.broadcast %210 : vector<40x1xf32> to vector<40x32xf32>
    %212 = arith.subf %204, %211 : vector<40x32xf32>
    %213 = arith.mulf %212, %212 : vector<40x32xf32>
    %cst_76 = arith.constant dense<0.000000e+00> : vector<40xf32>
    %214 = vector.multi_reduction <add>, %213, %cst_76 [1] : vector<40x32xf32> to vector<40xf32>
    %215 = vector.shape_cast %214 : vector<40xf32> to vector<40x1xf32>
    %cst_77 = arith.constant 3.200000e+01 : f32
    %216 = vector.broadcast %cst_77 : f32 to vector<40x1xf32>
    %217 = arith.divf %215, %216 : vector<40x1xf32>
    %218 = vector.broadcast %210 : vector<40x1xf32> to vector<40x32xf32>
    %219 = arith.subf %204, %218 : vector<40x32xf32>
    %cst_78 = arith.constant 9.99999974E-6 : f32
    %220 = vector.broadcast %cst_78 : f32 to vector<40x1xf32>
    %221 = arith.addf %217, %220 : vector<40x1xf32>
    %222 = math.rsqrt %221 : vector<40x1xf32>
    %223 = vector.broadcast %222 : vector<40x1xf32> to vector<40x32xf32>
    %224 = arith.mulf %219, %223 : vector<40x32xf32>
    %225 = vector.broadcast %205 : vector<1x32xf32> to vector<40x32xf32>
    %226 = arith.mulf %224, %225 : vector<40x32xf32>
    %227 = vector.broadcast %206 : vector<1x32xf32> to vector<40x32xf32>
    %228 = arith.addf %226, %227 : vector<40x32xf32>
    %c0_79 = arith.constant 0 : index
    %c0_80 = arith.constant 0 : index
    %229 = vector.load %arg10[%c0_79, %c0_80] : memref<40x32xf32, #tpu.memory_space<vmem>>, vector<40x32xf32>
    tpu.vector_store %arg10[%c0_79, %c0_80], %228 {strides = array<i32>} : memref<40x32xf32, #tpu.memory_space<vmem>>, vector<40x32xf32>,
    return
  }
  func.func @transform_0(%arg0: i32) -> (i32, i32) {
    %c0_i32 = arith.constant 0 : i32
    %c0_i32_0 = arith.constant 0 : i32
    %c0_i32_1 = arith.constant 0 : i32
    return %c0_i32, %c0_i32_0 : i32, i32
  }
  func.func @transform_1(%arg0: i32) -> (i32, i32) {
    %c0_i32 = arith.constant 0 : i32
    %c0_i32_0 = arith.constant 0 : i32
    %c0_i32_1 = arith.constant 0 : i32
    return %c0_i32, %c0_i32_0 : i32, i32
  }
  func.func @transform_2(%arg0: i32) -> (i32, i32) {
    %c0_i32 = arith.constant 0 : i32
    %c0_i32_0 = arith.constant 0 : i32
    %c0_i32_1 = arith.constant 0 : i32
    return %c0_i32, %c0_i32_0 : i32, i32
  }
  func.func @transform_3(%arg0: i32) -> (i32, i32) {
    %c0_i32 = arith.constant 0 : i32
    %c0_i32_0 = arith.constant 0 : i32
    %c0_i32_1 = arith.constant 0 : i32
    return %c0_i32, %c0_i32_0 : i32, i32
  }
  func.func @transform_4(%arg0: i32) -> (i32, i32) {
    %c0_i32 = arith.constant 0 : i32
    %c0_i32_0 = arith.constant 0 : i32
    %c0_i32_1 = arith.constant 0 : i32
    return %c0_i32, %c0_i32_0 : i32, i32
  }
  func.func @transform_5(%arg0: i32) -> (i32, i32, i32) {
    %c0_i32 = arith.constant 0 : i32
    %c0_i32_0 = arith.constant 0 : i32
    %c0_i32_1 = arith.constant 0 : i32
    %c0_i32_2 = arith.constant 0 : i32
    return %c0_i32, %c0_i32_0, %c0_i32_1 : i32, i32, i32
  }
  func.func @transform_6(%arg0: i32) -> (i32, i32, i32) {
    %c0_i32 = arith.constant 0 : i32
    %c0_i32_0 = arith.constant 0 : i32
    %c0_i32_1 = arith.constant 0 : i32
    %c0_i32_2 = arith.constant 0 : i32
    return %c0_i32, %c0_i32_0, %c0_i32_1 : i32, i32, i32
  }
  func.func @transform_7(%arg0: i32) -> (i32, i32, i32) {
    %c0_i32 = arith.constant 0 : i32
    %c0_i32_0 = arith.constant 0 : i32
    %c0_i32_1 = arith.constant 0 : i32
    %c0_i32_2 = arith.constant 0 : i32
    return %c0_i32, %c0_i32_0, %c0_i32_1 : i32, i32, i32
  }
  func.func @transform_8(%arg0: i32) -> (i32, i32) {
    %c0_i32 = arith.constant 0 : i32
    %c0_i32_0 = arith.constant 0 : i32
    %c0_i32_1 = arith.constant 0 : i32
    return %c0_i32, %c0_i32_0 : i32, i32
  }
  func.func @transform_9(%arg0: i32) -> (i32, i32) {
    %c0_i32 = arith.constant 0 : i32
    %c0_i32_0 = arith.constant 0 : i32
    %c0_i32_1 = arith.constant 0 : i32
    return %c0_i32, %c0_i32_0 : i32, i32
  }
}

</mosaic_0001>

<bundles_post_ra>
// kernel: tile.15
= control target key start
LH: loop header
LB: loop body
LE: loop exit
PB: predicated region body
PF: predicated region fallthrough
CT: control target
= control target key end

     0   :  { %vm57_vm0 = vcmask 1047556   ;;  %vm59_vm1 = vcmask 80896   ;;  %vm74_vm2 = vcmask 162896   ;;  %s161_s0 = inlined_call_operand.vmem [shape: f32[2,10,11], index: 0, kind: input, shape index: {}]   ;;  %s162_s1 = inlined_call_operand.vmem [shape: f32[20,11], index: 1, kind: output, shape index: {}]  }
   0x1   :  { %v95_v0 = vld [vmem:[%s161_s0 + $0xe] sm:$0x3]  ;;  %v96_v1 = vld [vmem:[%s161_s0 + $0xc] sm:$0x3]  ;;  %v97_v2 = vld [vmem:[%s161_s0 + $0xa] sm:$0x3] }
   0x2   :  { %23 = vst [vmem:[#allocation0 + $0x38] sm:$0x3] %v95_v0  ;;  %28 = vst [vmem:[#allocation0 + $0x30] sm:$0x3] %v96_v1  ;;  %v98_v3 = vld [vmem:[%s161_s0 + $0x8] sm:$0x3] }
   0x3   :  { %33 = vst [vmem:[#allocation0 + $0x28] sm:$0x3] %v97_v2  ;;  %v99_v4 = vld [vmem:[%s161_s0 + $0x6] sm:$0x3]  ;;  %v100_v5 = vld [vmem:[%s161_s0 + $0x4] sm:$0x3] }
   0x4   :  { %38 = vst [vmem:[#allocation0 + $0x20] sm:$0x3] %v98_v3  ;;  %43 = vst [vmem:[#allocation0 + $0x18] sm:$0x3] %v99_v4  ;;  %v101_v6 = vld [vmem:[%s161_s0 + $0x2] sm:$0x3] }
   0x5   :  { %48 = vst [vmem:[#allocation0 + $0x10] sm:$0x3] %v100_v5  ;;  %v53_v7 = vld [vmem:[%s161_s0] sm:$0x3]  ;;  %52 = vst [vmem:[#allocation0 + $0x8] sm:$0x3] %v101_v6 }
   0x6   :  { %54 = vst [vmem:[#allocation0] sm:$0x3] %v53_v7  ;;  %v92_v8 = vld [vmem:[%s161_s0 + $0x14] sm:$0x3]  ;;  %v93_v9 = vld [vmem:[%s161_s0 + $0x12] sm:$0x3] }
   0x7   :  { %v94_v10 = vld [vmem:[%s161_s0 + $0x10] sm:$0x3]  ;;  %8 = vst [vmem:[#allocation0 + $0x50] sm:$0x3] %v92_v8  ;;  %13 = vst [vmem:[#allocation0 + $0x48] sm:$0x3] %v93_v9 }
   0x8   :  { %18 = vst [vmem:[#allocation0 + $0x40] sm:$0x3] %v94_v10  ;;  %s105_s0 = smov 10  }
   0xb   :  { %v69_v11 = vld [vmem:[#allocation0 + $0x1] ss:$8 sm:$0xf0]   ;;  %v56_v12 = vld [vmem:[#allocation0] ss:$8 sm:$0xf0]  }
   0xd   :  { %v55_v13 = vld [vmem:[#allocation0] ss:$8 sm:$0xf]   ;;  %v67_v14 = vld [vmem:[#allocation0 + $0x1] ss:$8 sm:$0xf]  }
   0xe   :  { %v71_v15 = vsel %vm57_vm0, %v69_v11, %v67_v14  ;;  %v58_v16 = vsel %vm57_vm0, %v56_v12, %v55_v13 }
   0xf   :  { %v62_v17 = vld [vmem:[#allocation0 + $0x40] ss:$8 sm:$0x7]   ;;  %72 = vrot.lane.b32.xlu0 %v71_v15, %s105_s0  ;;  %60 = vst.msk [vmem:[%s162_s1] sm:$0xff] %vm59_vm1, %v58_v16  }
  0x10   :  { %102 = vst.msk [vmem:[%s162_s1 + $0x8] sm:$0x7] %vm59_vm1, %v62_v17   ;;  %v77_v18 = vld [vmem:[#allocation0 + $0x41] ss:$8 sm:$0x7]  }
  0x13   :  { %78 = vrot.lane.b32.xlu0 %v77_v18, %s105_s0 }
  0x81   :  { %v73_v19 = vpop.permute.xlu0 %72  }
  0x82   :  { %75 = vst.msk [vmem:[%s162_s1] sm:$0xff] %vm74_vm2, %v73_v19  }
  0x85   :  { %v79_v20 = vpop.permute.xlu0 %78  }
  0x86   :  { %103 = vst.msk [vmem:[%s162_s1 + $0x8] sm:$0x7] %vm74_vm2, %v79_v20  }

// kernel: spacetimeformer_forward.1
= control target key start
LH: loop header
LB: loop body
LE: loop exit
PB: predicated region body
PF: predicated region fallthrough
CT: control target
= control target key end

     0   :  { %vm51_vm0 = vcmask 261120   ;;  %s4235_s12 = smov 96   ;;  %vm350_vm2 = vcmask 523264   ;;  %s4236_s28 = smov 64   ;;  %vm4239_vm3 = vmmov 0   ;;  %vm1536_vm4 = vcmask 326656   ;;  %s5494_s5 = inlined_call_operand.vmem [shape: f32[3,32,128], index: 5, kind: input, shape index: {}]   ;;  %s5495_s0 = inlined_call_operand.vmem [shape: f32[64,32], index: 0, kind: input, shape index: {}]   ;;  %s5496_s2 = inlined_call_operand.vmem [shape: f32[64,64], index: 2, kind: input, shape index: {}]   ;;  %s5497_s6 = inlined_call_operand.vmem [shape: f32[2,32,64], index: 6, kind: input, shape index: {}]   ;;  %s5498_s7 = inlined_call_operand.vmem [shape: f32[2,64,32], index: 7, kind: input, shape index: {}]   ;;  %s5499_s8 = inlined_call_operand.vmem [shape: f32[14,64], index: 8, kind: input, shape index: {}]   ;;  %s5500_s1 = inlined_call_operand.vmem [shape: f32[40,32], index: 1, kind: input, shape index: {}]   ;;  %s5501_s3 = inlined_call_operand.vmem [shape: f32[40,40], index: 3, kind: input, shape index: {}]   ;;  %s5502_s4 = inlined_call_operand.vmem [shape: f32[40,64], index: 4, kind: input, shape index: {}]   ;;  %s5503_s9 = inlined_call_operand.vmem [shape: f32[40,32], index: 9, kind: output, shape index: {}]  }
   0x1   :  { %v4294_v0 = vld [vmem:[%s5494_s5] sm:$0xff]  ;;  %v4299_v1 = vld [vmem:[%s5494_s5 + $0x8] sm:$0xff]  ;;  %v4304_v2 = vld [vmem:[%s5494_s5 + $0x10] sm:$0xff] }
   0x2   :  { %v4020_v3 = vpack.i.bf16 %v4299_v1, %v4294_v0  ;;  %v3802_v4 = vpack.c.bf16 %v4299_v1, %v4294_v0  ;;  %v4313_v5 = vld [vmem:[%s5494_s5 + $0x18] sm:$0xff]  ;;  %v4318_v6 = vld [vmem:[%s5495_s0] sm:$0xff]  ;;  %v4327_v8 = vld [vmem:[%s5495_s0 + $0x8] sm:$0xff] }
   0x3   :  { %v3806_v7 = vpack.c.bf16 %v4313_v5, %v4304_v2  ;;  %3388 = vmatprep.mubr.msk.f32.mxu1 %vm51_vm0, %v4318_v6  ;;  %v4332_v9 = vld [vmem:[%s5495_s0 + $0x10] sm:$0xff]  ;;  %v4341_v10 = vld [vmem:[%s5495_s0 + $0x18] sm:$0xff]  ;;  %v4346_v11 = vld [vmem:[%s5495_s0 + $0x20] sm:$0xff] }
   0x4   :  { %3803 = vmatprep.subr.bf16.mxu1 %v3802_v4  ;;  %v4355_v12 = vld [vmem:[%s5495_s0 + $0x28] sm:$0xff]  ;;  %v4360_v13 = vld [vmem:[%s5495_s0 + $0x30] sm:$0xff]  ;;  %v4369_v14 = vld [vmem:[%s5495_s0 + $0x38] sm:$0xff] }
   0x5   :  { %3805 = vmatpush3.bf16.msra.mxu1 %v3802_v4  ;;  %vm4392_vm1 = vmpackc.low %vm51_vm0, %vm51_vm0  ;;  %v182_v44 = vld [vmem:[%s5496_s2 + $0x8] sm:$0xff]  ;;  %v181_v45 = vld [vmem:[%s5496_s2] sm:$0xff] }
   0x6   :  { %3807 = vmatprep.subr.bf16.mxu1 %v3806_v7  ;;  %v183_v51 = vld [vmem:[%s5496_s2 + $0x10] sm:$0xff]  ;;  %v184_v54 = vld [vmem:[%s5496_s2 + $0x18] sm:$0xff]  ;;  %v185_v57 = vld [vmem:[%s5496_s2 + $0x20] sm:$0xff] }
   0x7   :  { %v186_v61 = vld [vmem:[%s5496_s2 + $0x28] sm:$0xff]  ;;  %v187_v4 = vld [vmem:[%s5496_s2 + $0x30] sm:$0xff] }
   0x9   :  { %3809 = vmatpush3.bf16.msra.mxu1 %v3806_v7 }
   0xc   :  { %3389 = vmatmul.mubr.msk.f32.vlgmr.msra.gmra.mrb[0].mxu1 %vm51_vm0, %v4327_v8 }
   0xd   :  { %3391 = vmatprep.mubr.msk.f32.mxu1 %vm51_vm0, %v4332_v9 }
  0x10   :  { %3392 = vmatmul.mubr.msk.f32.gmra.mrb[2].mxu1 %vm51_vm0, %v4341_v10 }
  0x11   :  { %3394 = vmatprep.mubr.msk.f32.mxu1 %vm51_vm0, %v4346_v11 }
  0x14   :  { %3395 = vmatmul.mubr.msk.f32.gmra.mrb[4].mxu1 %vm51_vm0, %v4355_v12 }
  0x15   :  { %3397 = vmatprep.mubr.msk.f32.mxu1 %vm51_vm0, %v4360_v13 }
  0x18   :  { %3398 = vmatmul.mubr.msk.f32.gmra.mrb[6].mxu1 %vm51_vm0, %v4369_v14 }
  0xdf   :  { %v3390_v15 = vpop.f32.mrb[0].mxu1 }
  0xe0   :  { %v142_v16 = vpop.f32.mrb[1].mxu1 }
  0xe1   :  { %v4373_v17 = vpack.i.bf16 %v3390_v15, %v142_v16  ;;  %3416 = vmatprep.mubr.msk.f32.mxu1 %vm51_vm0, %v142_v16 }
  0xe3   :  { %3981 = vrot.lane.b32.xlu0 %v4373_v17, %s4235_s12  ;;  %v3393_v18 = vpop.f32.mrb[2].mxu1 }
  0xe4   :  { %v152_v19 = vpop.f32.mrb[3].mxu1 }
  0xe5   :  { %v4378_v20 = vpack.i.bf16 %v3393_v18, %v152_v19 }
  0xe7   :  { %3986 = vrot.lane.b32.xlu0 %v4378_v20, %s4235_s12  ;;  %v3396_v21 = vpop.f32.mrb[4].mxu1 }
  0xe8   :  { %v162_v22 = vpop.f32.mrb[5].mxu1 }
  0xe9   :  { %v4382_v23 = vpack.i.bf16 %v3396_v21, %v162_v22 }
  0xeb   :  { %3991 = vrot.lane.b32.xlu1 %v4382_v23, %s4235_s12  ;;  %v3399_v24 = vpop.f32.mrb[6].mxu1 }
  0xec   :  { %v172_v25 = vpop.f32.mrb[7].mxu1 }
  0xed   :  { %v4386_v26 = vpack.i.bf16 %v3399_v24, %v172_v25 }
  0xef   :  { %3996 = vrot.lane.b32.xlu1 %v4386_v26, %s4235_s12 }
 0x155   :  { %v3982_v27 = vpop.permute.xlu0 %3981 }
 0x156   :  { %v3984_v28 = vunpack.i.h.bf16 %v3982_v27  ;;  %v3983_v29 = vunpack.i.l.bf16 %v3982_v27 }
 0x158   :  { %v3810_v31 = vpack.c.bf16 %v3984_v28, %v3983_v29 }
 0x159   :  { %v3987_v32 = vpop.permute.xlu0 %3986 }
 0x15a   :  { %3812 = vmatprep.subr.msk.bf16.mxu1 %vm4392_vm1, %v3810_v31  ;;  %v3989_v33 = vunpack.i.h.bf16 %v3987_v32  ;;  %v3988_v34 = vunpack.i.l.bf16 %v3987_v32 }
 0x15b   :  { %3815 = vmatpush3.bf16.xpose.msk.msra.mxu1 %vm4392_vm1, %v3810_v31 }
 0x15c   :  { %v3816_v35 = vpack.c.bf16 %v3989_v33, %v3988_v34 }
 0x15d   :  { %v3992_v36 = vpop.permute.xlu1 %3991 }
 0x15e   :  { %3818 = vmatprep.subr.msk.bf16.mxu1 %vm4392_vm1, %v3816_v35  ;;  %v3994_v37 = vunpack.i.h.bf16 %v3992_v36  ;;  %v3993_v38 = vunpack.i.l.bf16 %v3992_v36 }
 0x160   :  { %v3822_v39 = vpack.c.bf16 %v3994_v37, %v3993_v38 }
 0x161   :  { %v3997_v40 = vpop.permute.xlu1 %3996 }
 0x162   :  { %v3999_v41 = vunpack.i.h.bf16 %v3997_v40  ;;  %v3998_v42 = vunpack.i.l.bf16 %v3997_v40 }
 0x163   :  { %3821 = vmatpush3.bf16.xpose.msk.msra.mxu1 %vm4392_vm1, %v3816_v35 }
 0x164   :  { %3824 = vmatprep.subr.msk.bf16.mxu1 %vm4392_vm1, %v3822_v39  ;;  %v3828_v43 = vpack.c.bf16 %v3999_v41, %v3998_v42 }
 0x16b   :  { %3827 = vmatpush3.bf16.xpose.msk.msra.mxu1 %vm4392_vm1, %v3822_v39 }
 0x16c   :  { %3830 = vmatprep.subr.msk.bf16.mxu1 %vm4392_vm1, %v3828_v43 }
 0x173   :  { %3833 = vmatpush3.bf16.xpose.msk.msra.mxu1 %vm4392_vm1, %v3828_v43 }
 0x17a   :  { %3417 = vmatmul.mubr.msk.f32.vlgmr.msra.gmra.mrb[8].mxu1 %vm51_vm0, %v3390_v15 }
 0x17b   :  { %3419 = vmatprep.mubr.msk.f32.mxu1 %vm51_vm0, %v152_v19  ;;  %v188_v19 = vld [vmem:[%s5496_s2 + $0x38] sm:$0xff]  ;;  %s4237_s2 = smov 32  }
 0x17e   :  { %3420 = vmatmul.mubr.msk.f32.gmra.mrb[10].mxu1 %vm51_vm0, %v3393_v18 }
 0x17f   :  { %3422 = vmatprep.mubr.msk.f32.mxu1 %vm51_vm0, %v162_v22 }
 0x182   :  { %3423 = vmatmul.mubr.msk.f32.gmra.mrb[12].mxu1 %vm51_vm0, %v3396_v21 }
 0x183   :  { %3425 = vmatprep.mubr.msk.f32.mxu1 %vm51_vm0, %v172_v25 }
 0x186   :  { %3426 = vmatmul.mubr.msk.f32.gmra.mrb[14].mxu1 %vm51_vm0, %v3399_v24 }
 0x24d   :  { %v3418_v46 = vpop.f32.mrb[8].mxu1 }
 0x24e   :  { %v317_v47 = vadd.f32 %v3418_v46, %v182_v44  ;;  %v311_v48 = vpop.f32.mrb[9].mxu1 }
 0x24f   :  { %v312_v49 = vadd.f32 %v311_v48, %v181_v45 }
 0x250   :  { %v354_v50 = vsel %vm350_vm2, %v317_v47, -inf }
 0x251   :  { %355 = vmax.xlane.f32.xlu1 %v354_v50  ;;  %v3421_v52 = vpop.f32.mrb[10].mxu1  ;;  %v351_v53 = vsel %vm350_vm2, %v312_v49, -inf }
 0x252   :  { %v321_v55 = vpop.f32.mrb[11].mxu1  ;;  %352 = vmax.xlane.f32.xlu0 %v351_v53  ;;  %v327_v58 = vadd.f32 %v3421_v52, %v184_v54 }
 0x253   :  { %v322_v56 = vadd.f32 %v321_v55, %v183_v51 }
 0x254   :  { %v360_v18 = vsel %vm350_vm2, %v327_v58, -inf }
 0x255   :  { %v3424_v59 = vpop.f32.mrb[12].mxu1  ;;  %v357_v60 = vsel %vm350_vm2, %v322_v56, -inf }
 0x256   :  { %v331_v62 = vpop.f32.mrb[13].mxu1  ;;  %358 = vmax.xlane.f32.xlu0 %v357_v60  ;;  %v337_v7 = vadd.f32 %v3424_v59, %v186_v61 }
 0x257   :  { %v332_v63 = vadd.f32 %v331_v62, %v185_v57 }
 0x258   :  { %v366_v27 = vsel %vm350_vm2, %v337_v7, -inf }
 0x259   :  { %v3427_v15 = vpop.f32.mrb[14].mxu1  ;;  %v363_v16 = vsel %vm350_vm2, %v332_v63, -inf }
 0x25a   :  { %v341_v21 = vpop.f32.mrb[15].mxu1  ;;  %364 = vmax.xlane.f32.xlu1 %v363_v16  ;;  %361 = vmax.xlane.f32.xlu0 %v360_v18  ;;  %v347_v24 = vadd.f32 %v3427_v15, %v188_v19 }
 0x25b   :  { %v342_v22 = vadd.f32 %v341_v21, %v187_v4 }
 0x25c   :  { %v372_v28 = vsel %vm350_vm2, %v347_v24, -inf }
 0x25d   :  { %v369_v25 = vsel %vm350_vm2, %v342_v22, -inf }
 0x25e   :  { %370 = vmax.xlane.f32.xlu1 %v369_v25  ;;  %367 = vmax.xlane.f32.xlu0 %v366_v27  ;;  %v4025_v25 = vpack.i.bf16 %v4313_v5, %v4304_v2 }
 0x262   :  { %373 = vmax.xlane.f32.xlu0 %v372_v28 }
 0x26f   :  { %4001 = vrot.lane.b32.xlu1 %v4373_v17, %s4236_s28 }
 0x2de   :  { %v356_v29 = vpop.xlane.xlu1 %355 }
 0x2df   :  { %v376_v31 = vsub.f32 %v317_v47, %v356_v29  ;;  %v353_v32 = vpop.xlane.xlu0 %352 }
 0x2e0   :  { %v375_v33 = vsub.f32 %v312_v49, %v353_v32 }
 0x2e1   :  { %v385_v34 = vmul.f32 1.442695, %v376_v31 }
 0x2e2   :  { %v383_v35 = vmul.f32 1.442695, %v375_v33 }
 0x2e3   :  { %4100 = vpow2.f32 %v385_v34  ;;  %v359_v36 = vpop.xlane.xlu0 %358 }
 0x2e4   :  { %4102 = vpow2.f32 %v383_v35  ;;  %v377_v37 = vsub.f32 %v322_v56, %v359_v36 }
 0x2e6   :  { %v387_v38 = vmul.f32 1.442695, %v377_v37 }
 0x2e7   :  { %v365_v39 = vpop.xlane.xlu1 %364  ;;  %v362_v40 = vpop.xlane.xlu0 %361 }
 0x2e8   :  { %4104 = vpow2.f32 %v387_v38  ;;  %v379_v41 = vsub.f32 %v332_v63, %v365_v39  ;;  %v378_v42 = vsub.f32 %v327_v58, %v362_v40 }
 0x2ea   :  { %v391_v43 = vmul.f32 1.442695, %v379_v41  ;;  %v389_v44 = vmul.f32 1.442695, %v378_v42 }
 0x2eb   :  { %v371_v45 = vpop.xlane.xlu1 %370  ;;  %v368_v17 = vpop.xlane.xlu0 %367 }
 0x2ec   :  { %4106 = vpow2.f32 %v391_v43  ;;  %v380_v46 = vsub.f32 %v337_v7, %v368_v17  ;;  %v381_v51 = vsub.f32 %v342_v22, %v371_v45 }
 0x2ed   :  { %v4453_v47 = vpop.eup %4100  ;;  %4108 = vpow2.f32 %v389_v44 }
 0x2ee   :  { %v4103_v48 = vpop.eup %4102  ;;  %v393_v49 = vmul.f32 1.442695, %v380_v46  ;;  %v402_v50 = vsel %vm350_vm2, %v4453_v47, 0.0  ;;  %v395_v61 = vmul.f32 1.442695, %v381_v51 }
 0x2ef   :  { %v4002_v52 = vpop.permute.xlu1 %4001  ;;  %403 = vadd.xlane.f32.xlu0 %v402_v50  ;;  %v374_v53 = vpop.xlane.xlu0 %373  ;;  %v399_v54 = vsel %vm350_vm2, %v4103_v48, 0.0 }
 0x2f0   :  { %v382_v55 = vsub.f32 %v347_v24, %v374_v53  ;;  %400 = vadd.xlane.f32.xlu1 %v399_v54  ;;  %v4004_v56 = vunpack.i.h.bf16 %v4002_v52  ;;  %v4003_v57 = vunpack.i.l.bf16 %v4002_v52  ;;  %4110 = vpow2.f32 %v393_v49 }
 0x2f2   :  { %v4458_v58 = vpop.eup %4104  ;;  %v397_v59 = vmul.f32 1.442695, %v382_v55  ;;  %v3834_v60 = vpack.c.bf16 %v4004_v56, %v4003_v57 }
 0x2f3   :  { %v405_v62 = vsel %vm350_vm2, %v4458_v58, 0.0 }
 0x2f4   :  { %4112 = vpow2.f32 %v397_v59  ;;  %3835 = vmatprep.subr.bf16.mxu0 %v3834_v60  ;;  %406 = vadd.xlane.f32.xlu1 %v405_v62 }
 0x2f5   :  { %3837 = vmatpush3.bf16.msra.mxu0 %v3834_v60  ;;  %4114 = vpow2.f32 %v395_v61 }
 0x2f6   :  { %v4462_v63 = vpop.eup %4106 }
 0x2f7   :  { %v4464_v4 = vpop.eup %4108  ;;  %v411_v7 = vsel %vm350_vm2, %v4462_v63, 0.0 }
 0x2f8   :  { %412 = vadd.xlane.f32.xlu1 %v411_v7  ;;  %v408_v15 = vsel %vm350_vm2, %v4464_v4, 0.0 }
 0x2f9   :  { %409 = vadd.xlane.f32.xlu0 %v408_v15 }
 0x2fa   :  { %v4470_v16 = vpop.eup %4110 }
 0x2fb   :  { %v414_v18 = vsel %vm350_vm2, %v4470_v16, 0.0 }
 0x2fd   :  { %415 = vadd.xlane.f32.xlu0 %v414_v18 }
 0x2fe   :  { %v4474_v19 = vpop.eup %4112 }
 0x2ff   :  { %v420_v21 = vsel %vm350_vm2, %v4474_v19, 0.0  ;;  %v4478_v22 = vpop.eup %4114 }
 0x300   :  { %v417_v24 = vsel %vm350_vm2, %v4478_v22, 0.0 }
 0x301   :  { %421 = vadd.xlane.f32.xlu0 %v420_v21 }
 0x305   :  { %418 = vadd.xlane.f32.xlu0 %v417_v24 }
 0x309   :  { %4011 = vrot.lane.b32.xlu1 %v4382_v23, %s4236_s28 }
 0x30d   :  { %4016 = vrot.lane.b32.xlu1 %v4386_v26, %s4236_s28 }
 0x311   :  { %4021 = vrot.lane.b32.xlu1 %v4020_v3, %s4237_s2 }
 0x315   :  { %4026 = vrot.lane.b32.xlu1 %v4025_v25, %s4237_s2 }
 0x31b   :  { %4006 = vrot.lane.b32.xlu0 %v4378_v20, %s4236_s28 }
 0x37c   :  { %v404_v23 = vpop.xlane.xlu0 %403 }
 0x37d   :  { %v401_v27 = vpop.xlane.xlu1 %400 }
 0x37e   :  { %4116 = vrcp.f32 %v401_v27 }
 0x37f   :  { %4118 = vrcp.f32 %v404_v23 }
 0x381   :  { %v407_v28 = vpop.xlane.xlu1 %406 }
 0x382   :  { %4120 = vrcp.f32 %v407_v28 }
 0x385   :  { %v413_v20 = vpop.xlane.xlu1 %412 }
 0x386   :  { %v410_v29 = vpop.xlane.xlu0 %409 }
 0x387   :  { %4122 = vrcp.f32 %v410_v29 }
 0x388   :  { %v4117_v26 = vpop.eup %4116  ;;  %4124 = vrcp.f32 %v413_v20 }
 0x389   :  { %v431_v31 = vmul.f32 %v4117_v26, %v4103_v48  ;;  %v4012_v34 = vpop.permute.xlu1 %4011  ;;  %v4119_v42 = vpop.eup %4118 }
 0x38a   :  { %v416_v32 = vpop.xlane.xlu0 %415  ;;  %v4014_v3 = vunpack.i.h.bf16 %v4012_v34  ;;  %v4013_v35 = vunpack.i.l.bf16 %v4012_v34  ;;  %v432_v44 = vmul.f32 %v4119_v42, %v4453_v47 }
 0x38b   :  { %3444 = vmatprep.mubr.msk.f32.mxu0 %vm350_vm2, %v431_v31  ;;  %4126 = vrcp.f32 %v416_v32 }
 0x38c   :  { %v3842_v40 = vpack.c.bf16 %v4014_v3, %v4013_v35  ;;  %v4121_v43 = vpop.eup %4120 }
 0x38d   :  { %v4017_v36 = vpop.permute.xlu1 %4016  ;;  %v433_v17 = vmul.f32 %v4121_v43, %v4458_v58 }
 0x38e   :  { %v422_v33 = vpop.xlane.xlu0 %421  ;;  %v4019_v38 = vunpack.i.h.bf16 %v4017_v36  ;;  %v4018_v39 = vunpack.i.l.bf16 %v4017_v36 }
 0x390   :  { %v3846_v41 = vpack.c.bf16 %v4019_v38, %v4018_v39 }
 0x391   :  { %v4123_v45 = vpop.eup %4122  ;;  %v4022_v46 = vpop.permute.xlu1 %4021 }
 0x392   :  { %v419_v0 = vpop.xlane.xlu0 %418  ;;  %v4125_v48 = vpop.eup %4124  ;;  %v4024_v49 = vunpack.i.h.bf16 %v4022_v46  ;;  %v4023_v50 = vunpack.i.l.bf16 %v4022_v46  ;;  %v434_v51 = vmul.f32 %v4123_v45, %v4464_v4 }
 0x393   :  { %4128 = vrcp.f32 %v419_v0  ;;  %v435_v54 = vmul.f32 %v4125_v48, %v4462_v63 }
 0x394   :  { %4130 = vrcp.f32 %v422_v33  ;;  %v3850_v52 = vpack.c.bf16 %v4024_v49, %v4023_v50 }
 0x395   :  { %v4127_v53 = vpop.eup %4126  ;;  %v4027_v55 = vpop.permute.xlu1 %4026 }
 0x396   :  { %v4007_v1 = vpop.permute.xlu0 %4006  ;;  %v4029_v47 = vunpack.i.h.bf16 %v4027_v55  ;;  %v4028_v57 = vunpack.i.l.bf16 %v4027_v55  ;;  %v436_v58 = vmul.f32 %v4127_v53, %v4470_v16 }
 0x397   :  { %v4009_v2 = vunpack.i.h.bf16 %v4007_v1  ;;  %v4008_v5 = vunpack.i.l.bf16 %v4007_v1 }
 0x398   :  { %v3854_v59 = vpack.c.bf16 %v4029_v47, %v4028_v57 }
 0x399   :  { %v3838_v37 = vpack.c.bf16 %v4009_v2, %v4008_v5 }
 0x39b   :  { %3839 = vmatprep.subr.bf16.mxu0 %v3838_v37 }
 0x39c   :  { %3841 = vmatpush3.bf16.msra.mxu0 %v3838_v37 }
 0x39d   :  { %3843 = vmatprep.subr.bf16.mxu0 %v3842_v40  ;;  %v4129_v56 = vpop.eup %4128 }
 0x39e   :  { %v4131_v60 = vpop.eup %4130  ;;  %v437_v61 = vmul.f32 %v4129_v56, %v4478_v22 }
 0x39f   :  { %v438_v62 = vmul.f32 %v4131_v60, %v4474_v19 }
 0x3a0   :  { %3845 = vmatpush3.bf16.msra.mxu0 %v3842_v40 }
 0x3a1   :  { %3847 = vmatprep.subr.bf16.mxu0 %v3846_v41 }
 0x3a4   :  { %3849 = vmatpush3.bf16.msra.mxu0 %v3846_v41 }
 0x3a5   :  { %3851 = vmatprep.subr.bf16.mxu0 %v3850_v52 }
 0x3a7   :  { %3445 = vmatmul.mubr.msk.f32.vlgmr.msra.gmra.mrb[0].mxu0 %vm350_vm2, %v432_v44 }
 0x3a8   :  { %3447 = vmatprep.mubr.msk.f32.mxu0 %vm350_vm2, %v433_v17  ;;  %3853 = vmatpush3.bf16.msra.mxu0 %v3850_v52 }
 0x3a9   :  { %3855 = vmatprep.subr.bf16.mxu0 %v3854_v59 }
 0x3ab   :  { %3448 = vmatmul.mubr.msk.f32.gmra.mrb[2].mxu0 %vm350_vm2, %v434_v51 }
 0x3ac   :  { %3450 = vmatprep.mubr.msk.f32.mxu0 %vm350_vm2, %v435_v54  ;;  %3857 = vmatpush3.bf16.msra.mxu0 %v3854_v59 }
 0x3af   :  { %3451 = vmatmul.mubr.msk.f32.gmra.mrb[4].mxu0 %vm350_vm2, %v436_v58 }
 0x3b0   :  { %3453 = vmatprep.mubr.msk.f32.mxu0 %vm350_vm2, %v437_v61 }
 0x3b3   :  { %3454 = vmatmul.mubr.msk.f32.gmra.mrb[6].mxu0 %vm350_vm2, %v438_v62 }
 0x47a   :  { %v3446_v63 = vpop.f32.mrb[0].mxu0 }
 0x47b   :  { %v553_v4 = vpop.f32.mrb[1].mxu0 }
 0x47c   :  { %3464 = vmatprep.mubr.msk.f32.mxu0 %vm51_vm0, %v553_v4 }
 0x47d   :  { %3465 = vmatmul.mubr.msk.f32.vlgmr.msra.gmra.mrb[8].mxu0 %vm51_vm0, %v3446_v63 }
 0x47e   :  { %v3449_v7 = vpop.f32.mrb[2].mxu0 }
 0x47f   :  { %v563_v15 = vpop.f32.mrb[3].mxu0 }
 0x480   :  { %3467 = vmatprep.mubr.msk.f32.mxu0 %vm51_vm0, %v563_v15 }
 0x481   :  { %3468 = vmatmul.mubr.msk.f32.gmra.mrb[10].mxu0 %vm51_vm0, %v3449_v7 }
 0x482   :  { %v3452_v16 = vpop.f32.mrb[4].mxu0 }
 0x483   :  { %v573_v18 = vpop.f32.mrb[5].mxu0 }
 0x484   :  { %3470 = vmatprep.mubr.msk.f32.mxu0 %vm51_vm0, %v573_v18 }
 0x485   :  { %3471 = vmatmul.mubr.msk.f32.gmra.mrb[12].mxu0 %vm51_vm0, %v3452_v16 }
 0x486   :  { %v3455_v19 = vpop.f32.mrb[6].mxu0 }
 0x487   :  { %v583_v21 = vpop.f32.mrb[7].mxu0 }
 0x488   :  { %3473 = vmatprep.mubr.msk.f32.mxu0 %vm51_vm0, %v583_v21 }
 0x489   :  { %3474 = vmatmul.mubr.msk.f32.gmra.mrb[14].mxu0 %vm51_vm0, %v3455_v19 }
 0x550   :  { %v3466_v22 = vpop.f32.mrb[8].mxu0 }
 0x551   :  { %v738_v24 = vadd.f32 %v3466_v22, %v4327_v8  ;;  %v698_v25 = vpop.f32.mrb[9].mxu0 }
 0x552   :  { %v737_v27 = vadd.f32 %v698_v25, %v4318_v6  ;;  %v875_v25 = vld [vmem:[%s5497_s6 + $0x8] sm:$0xff] }
 0x553   :  { %v748_v23 = vsel %vm51_vm0, %v738_v24, 0.0 }
 0x554   :  { %749 = vadd.xlane.f32.xlu1 %v748_v23  ;;  %v3469_v28 = vpop.f32.mrb[10].mxu0  ;;  %v745_v29 = vsel %vm51_vm0, %v737_v27, 0.0  ;;  %v876_v23 = vld [vmem:[%s5497_s6 + $0x10] sm:$0xff] }
 0x555   :  { %746 = vadd.xlane.f32.xlu0 %v745_v29  ;;  %v708_v26 = vpop.f32.mrb[11].mxu0  ;;  %v740_v32 = vadd.f32 %v3469_v28, %v4341_v10  ;;  %v877_v28 = vld [vmem:[%s5497_s6 + $0x18] sm:$0xff] }
 0x556   :  { %v739_v31 = vadd.f32 %v708_v26, %v4332_v9  ;;  %v3862_v29 = vpack.c.bf16 %v877_v28, %v876_v23  ;;  %v4238_v26 = vmov 0.0|0.0   ;;  %v4642_v23 = vld [vmem:[%s5494_s5 + $0x30] sm:$0xff]  ;;  %v4647_v28 = vld [vmem:[%s5494_s5 + $0x38] sm:$0xff] }
 0x557   :  { %v754_v1 = vsel %vm51_vm0, %v740_v32, 0.0 }
 0x558   :  { %v3472_v20 = vpop.f32.mrb[12].mxu0  ;;  %v751_v33 = vsel %vm51_vm0, %v739_v31, 0.0 }
 0x559   :  { %752 = vadd.xlane.f32.xlu0 %v751_v33  ;;  %v718_v8 = vpop.f32.mrb[13].mxu0  ;;  %v742_v6 = vadd.f32 %v3472_v20, %v4355_v12  ;;  %v1021_v20 = vld [vmem:[%s5498_s7 + $0x10] sm:$0xff] }
 0x55a   :  { %v741_v34 = vadd.f32 %v718_v8, %v4346_v11  ;;  %v1022_v8 = vld [vmem:[%s5498_s7 + $0x18] sm:$0xff] }
 0x55b   :  { %v760_v2 = vsel %vm51_vm0, %v742_v6, 0.0 }
 0x55c   :  { %v3475_v0 = vpop.f32.mrb[14].mxu0  ;;  %v757_v3 = vsel %vm51_vm0, %v741_v34, 0.0 }
 0x55d   :  { %755 = vadd.xlane.f32.xlu0 %v754_v1  ;;  %758 = vadd.xlane.f32.xlu1 %v757_v3  ;;  %v728_v35 = vpop.f32.mrb[15].mxu0  ;;  %v744_v10 = vadd.f32 %v3475_v0, %v4369_v14  ;;  %v1024_v0 = vld [vmem:[%s5498_s7 + $0x28] sm:$0xff] }
 0x55e   :  { %v743_v9 = vadd.f32 %v728_v35, %v4360_v13 }
 0x55f   :  { %v766_v11 = vsel %vm51_vm0, %v744_v10, 0.0 }
 0x560   :  { %v763_v5 = vsel %vm51_vm0, %v743_v9, 0.0 }
 0x561   :  { %761 = vadd.xlane.f32.xlu0 %v760_v2  ;;  %764 = vadd.xlane.f32.xlu1 %v763_v5 }
 0x565   :  { %767 = vadd.xlane.f32.xlu0 %v766_v11 }
 0x5e1   :  { %v750_v12 = vpop.xlane.xlu1 %749 }
 0x5e2   :  { %v771_v36 = vmul.f32 0.03125, %v750_v12  ;;  %v747_v37 = vpop.xlane.xlu0 %746 }
 0x5e3   :  { %v770_v38 = vmul.f32 0.03125, %v747_v37 }
 0x5e4   :  { %v4534_v39 = vsub.f32 %v738_v24, %v771_v36  ;;  %v874_v24 = vld [vmem:[%s5497_s6] sm:$0xff] }
 0x5e5   :  { %v4536_v40 = vsub.f32 %v737_v27, %v770_v38  ;;  %v3858_v27 = vpack.c.bf16 %v875_v25, %v874_v24 }
 0x5e6   :  { %v753_v13 = vpop.xlane.xlu0 %752  ;;  %v787_v14 = vmul.f32 %v4534_v39, %v4534_v39 }
 0x5e7   :  { %v772_v41 = vmul.f32 0.03125, %v753_v13  ;;  %v786_v42 = vmul.f32 %v4536_v40, %v4536_v40  ;;  %3859 = vmatprep.subr.bf16.mxu1 %v3858_v27 }
 0x5e8   :  { %v797_v43 = vsel %vm51_vm0, %v787_v14, 0.0  ;;  %3861 = vmatpush3.bf16.msra.mxu1 %v3858_v27 }
 0x5e9   :  { %v4543_v44 = vsub.f32 %v739_v31, %v772_v41  ;;  %798 = vadd.xlane.f32.xlu0 %v797_v43  ;;  %v794_v45 = vsel %vm51_vm0, %v786_v42, 0.0  ;;  %3863 = vmatprep.subr.bf16.mxu1 %v3862_v29  ;;  %v1019_v31 = vld [vmem:[%s5498_s7] sm:$0xff] }
 0x5ea   :  { %v756_v17 = vpop.xlane.xlu0 %755  ;;  %v759_v46 = vpop.xlane.xlu1 %758  ;;  %795 = vadd.xlane.f32.xlu1 %v794_v45  ;;  %v4611_v45 = vld [vmem:[%s5499_s8] sm:$0xff] }
 0x5eb   :  { %v773_v48 = vmul.f32 0.03125, %v756_v17  ;;  %v774_v49 = vmul.f32 0.03125, %v759_v46  ;;  %v788_v50 = vmul.f32 %v4543_v44, %v4543_v44 }
 0x5ec   :  { %3865 = vmatpush3.bf16.msra.mxu1 %v3862_v29 }
 0x5ed   :  { %v4548_v51 = vsub.f32 %v740_v32, %v773_v48  ;;  %v4550_v52 = vsub.f32 %v741_v34, %v774_v49  ;;  %v800_v53 = vsel %vm51_vm0, %v788_v50, 0.0  ;;  %3882 = vmatprep.subr.bf16.mxu1 %v4238_v26  ;;  %v1020_v32 = vld [vmem:[%s5498_s7 + $0x8] sm:$0xff]  ;;  %v3870_v34 = vpack.c.bf16 %v1022_v8, %v1021_v20 }
 0x5ee   :  { %v762_v54 = vpop.xlane.xlu0 %761  ;;  %801 = vadd.xlane.f32.xlu1 %v800_v53  ;;  %v765_v55 = vpop.xlane.xlu1 %764  ;;  %v3866_v33 = vpack.c.bf16 %v1020_v32, %v1019_v31 }
 0x5ef   :  { %v775_v56 = vmul.f32 0.03125, %v762_v54  ;;  %v776_v47 = vmul.f32 0.03125, %v765_v55  ;;  %v789_v57 = vmul.f32 %v4548_v51, %v4548_v51  ;;  %v790_v58 = vmul.f32 %v4550_v52, %v4550_v52 }
 0x5f0   :  { %3867 = vmatprep.subr.bf16.mxu0 %v3866_v33 }
 0x5f1   :  { %v4557_v59 = vsub.f32 %v742_v6, %v775_v56  ;;  %v4559_v60 = vsub.f32 %v743_v9, %v776_v47  ;;  %v803_v61 = vsel %vm51_vm0, %v789_v57, 0.0  ;;  %v806_v62 = vsel %vm51_vm0, %v790_v58, 0.0  ;;  %v1023_v6 = vld [vmem:[%s5498_s7 + $0x20] sm:$0xff]  ;;  %3869 = vmatpush3.bf16.msra.mxu0 %v3866_v33 }
 0x5f2   :  { %804 = vadd.xlane.f32.xlu0 %v803_v61  ;;  %v768_v63 = vpop.xlane.xlu0 %767  ;;  %807 = vadd.xlane.f32.xlu1 %v806_v62  ;;  %v3874_v1 = vpack.c.bf16 %v1024_v0, %v1023_v6  ;;  %v3886_v33 = vpack.c.bf16 %v4647_v28, %v4642_v23 }
 0x5f3   :  { %v777_v4 = vmul.f32 0.03125, %v768_v63  ;;  %v791_v7 = vmul.f32 %v4557_v59, %v4557_v59  ;;  %v792_v15 = vmul.f32 %v4559_v60, %v4559_v60  ;;  %3871 = vmatprep.subr.bf16.mxu0 %v3870_v34 }
 0x5f5   :  { %v4567_v16 = vsub.f32 %v744_v10, %v777_v4  ;;  %v809_v18 = vsel %vm51_vm0, %v791_v7, 0.0  ;;  %v812_v19 = vsel %vm51_vm0, %v792_v15, 0.0  ;;  %3873 = vmatpush3.bf16.msra.mxu0 %v3870_v34  ;;  %v850_v10 = vlaneseq }
 0x5f6   :  { %810 = vadd.xlane.f32.xlu0 %v809_v18  ;;  %813 = vadd.xlane.f32.xlu1 %v812_v19  ;;  %v4625_v18 = vld [vmem:[%s5494_s5 + $0x20] sm:$0xff] }
 0x5f7   :  { %v793_v21 = vmul.f32 %v4567_v16, %v4567_v16  ;;  %3875 = vmatprep.subr.bf16.mxu0 %v3874_v1  ;;  %v4605_v36 = vshrl.u32 %v850_v10, 7 }
 0x5f9   :  { %v815_v22 = vsel %vm51_vm0, %v793_v21, 0.0  ;;  %3877 = vmatpush3.bf16.msra.mxu0 %v3874_v1  ;;  %v852_v41 = vsub.s32 0, %v4605_v36  ;;  %v864_v48 = vsub.s32 1, %v4605_v36 }
 0x5fa   :  { %816 = vadd.xlane.f32.xlu0 %v815_v22 }
 0x5fb   :  { %v853_v53 = vrot.slane %v4611_v45, %v852_v41  ;;  %v865_v62 = vrot.slane %v4611_v45, %v864_v48 }
 0x676   :  { %v799_v3 = vpop.xlane.xlu0 %798 }
 0x677   :  { %v819_v35 = vmul.f32 0.03125, %v799_v3  ;;  %v796_v9 = vpop.xlane.xlu1 %795 }
 0x678   :  { %v818_v2 = vmul.f32 0.03125, %v796_v9 }
 0x679   :  { %v827_v5 = vadd.f32 1e-05, %v819_v35 }
 0x67a   :  { %v826_v11 = vadd.f32 1e-05, %v818_v2 }
 0x67b   :  { %4132 = vrsqrt.f32 %v827_v5  ;;  %v802_v12 = vpop.xlane.xlu1 %801 }
 0x67c   :  { %4134 = vrsqrt.f32 %v826_v11  ;;  %v820_v37 = vmul.f32 0.03125, %v802_v12 }
 0x67e   :  { %v828_v38 = vadd.f32 1e-05, %v820_v37  ;;  %v4240_v37 = vmov 0.0  }
 0x67f   :  { %v805_v13 = vpop.xlane.xlu0 %804  ;;  %v808_v14 = vpop.xlane.xlu1 %807 }
 0x680   :  { %4136 = vrsqrt.f32 %v828_v38  ;;  %v821_v42 = vmul.f32 0.03125, %v805_v13  ;;  %v822_v43 = vmul.f32 0.03125, %v808_v14  ;;  %v4700_v38 = vld [vmem:[%s5500_s1 + $0x8] sm:$0xff]  ;;  %v4709_v13 = vld [vmem:[%s5500_s1 + $0x10] sm:$0xff]  ;;  %v4718_v14 = vld [vmem:[%s5500_s1 + $0x18] sm:$0xff] }
 0x682   :  { %v829_v17 = vadd.f32 1e-05, %v821_v42  ;;  %v830_v46 = vadd.f32 1e-05, %v822_v43  ;;  %v4727_v42 = vld [vmem:[%s5500_s1 + $0x20] sm:$0xff]  ;;  %v1025_v43 = vld [vmem:[%s5498_s7 + $0x30] sm:$0xff] }
 0x683   :  { %v811_v49 = vpop.xlane.xlu0 %810  ;;  %v814_v50 = vpop.xlane.xlu1 %813 }
 0x684   :  { %4138 = vrsqrt.f32 %v829_v17  ;;  %v823_v54 = vmul.f32 0.03125, %v811_v49  ;;  %v824_v55 = vmul.f32 0.03125, %v814_v50  ;;  %v1026_v17 = vld [vmem:[%s5498_s7 + $0x38] sm:$0xff]  ;;  %v880_v49 = vsub.s32 4, %v4605_v36 }
 0x685   :  { %v4133_v56 = vpop.eup %4132  ;;  %4140 = vrsqrt.f32 %v830_v46  ;;  %v3878_v46 = vpack.c.bf16 %v1026_v17, %v1025_v43 }
 0x686   :  { %v4135_v47 = vpop.eup %4134  ;;  %v843_v57 = vmul.f32 %v4133_v56, %v4534_v39  ;;  %v831_v58 = vadd.f32 1e-05, %v823_v54  ;;  %v832_v61 = vadd.f32 1e-05, %v824_v55  ;;  %v4630_v39 = vld [vmem:[%s5494_s5 + $0x28] sm:$0xff]  ;;  %v881_v50 = vrot.slane %v4611_v45, %v880_v49 }
 0x687   :  { %v817_v63 = vpop.xlane.xlu0 %816  ;;  %v842_v4 = vmul.f32 %v4135_v47, %v4536_v40  ;;  %v3883_v25 = vpack.c.bf16 %v4630_v39, %v4625_v18  ;;  %3879 = vmatprep.subr.bf16.mxu0 %v3878_v46 }
 0x688   :  { %v855_v7 = vmul.f32 %v853_v53, %v843_v57  ;;  %4142 = vrsqrt.f32 %v831_v58  ;;  %v825_v15 = vmul.f32 0.03125, %v817_v63  ;;  %3881 = vmatpush3.bf16.msra.mxu0 %v3878_v46 }
 0x689   :  { %4144 = vrsqrt.f32 %v832_v61  ;;  %v854_v19 = vmul.f32 %v853_v53, %v842_v4  ;;  %3888 = vmatprep.subr.bf16.mxu0 %v4238_v26 }
 0x68a   :  { %v4137_v21 = vpop.eup %4136  ;;  %v833_v22 = vadd.f32 1e-05, %v825_v15  ;;  %v4637_v27 = vadd.f32 %v865_v62, %v855_v7 }
 0x68b   :  { %v4632_v24 = vadd.f32 %v865_v62, %v854_v19  ;;  %v844_v40 = vmul.f32 %v4137_v21, %v4543_v44 }
 0x68c   :  { %4146 = vrsqrt.f32 %v833_v22 }
 0x68d   :  { %3484 = vmatprep.mubr.msk.f32.mxu1 %vm51_vm0, %v4632_v24  ;;  %v856_v44 = vmul.f32 %v853_v53, %v844_v40 }
 0x68e   :  { %v4139_v29 = vpop.eup %4138  ;;  %3485 = vmatmul.mubr.msk.f32.vlgmr.msra.gmra.mrb[16].mxu1 %vm51_vm0, %v4637_v27 }
 0x68f   :  { %v4141_v31 = vpop.eup %4140  ;;  %v4653_v32 = vadd.f32 %v865_v62, %v856_v44  ;;  %v845_v20 = vmul.f32 %v4139_v29, %v4548_v51  ;;  %3884 = vmatpush3.bf16.msra.mxu1 %v3883_v25 }
 0x690   :  { %v846_v8 = vmul.f32 %v4141_v31, %v4550_v52  ;;  %3885 = vmatprep.subr.bf16.mxu1 %v4238_v26 }
 0x691   :  { %3487 = vmatprep.mubr.msk.f32.mxu1 %vm51_vm0, %v4653_v32  ;;  %v857_v34 = vmul.f32 %v853_v53, %v845_v20 }
 0x692   :  { %v4143_v6 = vpop.eup %4142  ;;  %v858_v0 = vmul.f32 %v853_v53, %v846_v8 }
 0x693   :  { %v4145_v1 = vpop.eup %4144  ;;  %v4662_v3 = vadd.f32 %v865_v62, %v857_v34  ;;  %v847_v35 = vmul.f32 %v4143_v6, %v4557_v59  ;;  %3887 = vmatpush3.bf16.msra.mxu1 %v3886_v33 }
 0x694   :  { %v4665_v51 = vadd.f32 %v865_v62, %v858_v0  ;;  %v848_v9 = vmul.f32 %v4145_v1, %v4559_v60  ;;  %3896 = vmatprep.subr.bf16.mxu1 %v4238_v26 }
 0x695   :  { %3488 = vmatmul.mubr.msk.f32.gmra.mrb[18].mxu1 %vm51_vm0, %v4662_v3  ;;  %v859_v52 = vmul.f32 %v853_v53, %v847_v35 }
 0x696   :  { %v4147_v10 = vpop.eup %4146  ;;  %3490 = vmatprep.mubr.msk.f32.mxu1 %vm51_vm0, %v4665_v51  ;;  %v860_v2 = vmul.f32 %v853_v53, %v848_v9 }
 0x697   :  { %v4673_v5 = vadd.f32 %v865_v62, %v859_v52  ;;  %v849_v59 = vmul.f32 %v4147_v10, %v4567_v16  ;;  %v4691_v16 = vld [vmem:[%s5500_s1] sm:$0xff] }
 0x698   :  { %v4676_v11 = vadd.f32 %v865_v62, %v860_v2 }
 0x699   :  { %3491 = vmatmul.mubr.msk.f32.gmra.mrb[20].mxu1 %vm51_vm0, %v4673_v5  ;;  %v861_v60 = vmul.f32 %v853_v53, %v849_v59 }
 0x69a   :  { %3493 = vmatprep.mubr.msk.f32.mxu1 %vm51_vm0, %v4676_v11 }
 0x69b   :  { %v4682_v12 = vadd.f32 %v865_v62, %v861_v60 }
 0x69d   :  { %3494 = vmatmul.mubr.msk.f32.gmra.mrb[22].mxu1 %vm51_vm0, %v4682_v12 }
 0x69e   :  { %3532 = vmatprep.mubr.msk.f32.mxu1 %vm4239_vm3, %v4240_v37 }
 0x6a1   :  { %3533 = vmatmul.mubr.msk.f32.vlgmr.msra.gmra.mrb[24].mxu1 %vm51_vm0, %v4691_v16 }
 0x6a2   :  { %3535 = vmatprep.mubr.msk.f32.mxu1 %vm4239_vm3, %v4240_v37 }
 0x6a5   :  { %3536 = vmatmul.mubr.msk.f32.gmra.mrb[26].mxu1 %vm51_vm0, %v4700_v38 }
 0x6a6   :  { %3538 = vmatprep.mubr.msk.f32.mxu1 %vm4239_vm3, %v4240_v37 }
 0x6a9   :  { %3539 = vmatmul.mubr.msk.f32.gmra.mrb[28].mxu1 %vm51_vm0, %v4709_v13 }
 0x6aa   :  { %3541 = vmatprep.mubr.msk.f32.mxu1 %vm4239_vm3, %v4240_v37 }
 0x6ad   :  { %3542 = vmatmul.mubr.msk.f32.gmra.mrb[30].mxu1 %vm51_vm0, %v4718_v14 }
 0x6ae   :  { %3544 = vmatprep.mubr.msk.f32.mxu1 %vm4239_vm3, %v4240_v37 }
 0x6b1   :  { %3545 = vmatmul.mubr.msk.f32.gmra.mrb[32].mxu1 %vm51_vm0, %v4727_v42 }
 0x6b2   :  { %3582 = vmatprep.mubr.msk.f32.mxu1 %vm4239_vm3, %v4240_v37 }
 0x761   :  { %v3486_v53 = vpop.f32.mrb[16].mxu1 }
 0x762   :  { %v978_v54 = vadd.f32 %v3486_v53, %v881_v50  ;;  %v972_v55 = vpop.f32.mrb[17].mxu1 }
 0x763   :  { %v973_v56 = vadd.f32 %v972_v55, %v881_v50 }
 0x764   :  { %v1012_v57 = vmax.f32 %v978_v54, 0.0 }
 0x765   :  { %v1011_v47 = vmax.f32 %v973_v56, 0.0 }
 0x767   :  { %3512 = vmatprep.mubr.msk.f32.mxu0 %vm350_vm2, %v1011_v47 }
 0x768   :  { %v3489_v58 = vpop.f32.mrb[18].mxu1  ;;  %3513 = vmatmul.mubr.msk.f32.vlgmr.msra.gmra.mrb[16].mxu0 %vm350_vm2, %v1012_v57 }
 0x769   :  { %v988_v61 = vadd.f32 %v3489_v58, %v881_v50  ;;  %v982_v62 = vpop.f32.mrb[19].mxu1 }
 0x76a   :  { %v983_v63 = vadd.f32 %v982_v62, %v881_v50 }
 0x76b   :  { %v1014_v15 = vmax.f32 %v988_v61, 0.0 }
 0x76c   :  { %v1013_v4 = vmax.f32 %v983_v63, 0.0  ;;  %v3492_v7 = vpop.f32.mrb[20].mxu1 }
 0x76d   :  { %v998_v19 = vadd.f32 %v3492_v7, %v881_v50  ;;  %v992_v21 = vpop.f32.mrb[21].mxu1 }
 0x76e   :  { %v993_v22 = vadd.f32 %v992_v21, %v881_v50  ;;  %3515 = vmatprep.mubr.msk.f32.mxu0 %vm350_vm2, %v1013_v4  ;;  %v1406_v21 = vld [vmem:[%s5501_s3] sm:$0xff] }
 0x76f   :  { %3516 = vmatmul.mubr.msk.f32.gmra.mrb[18].mxu0 %vm350_vm2, %v1014_v15  ;;  %v1016_v44 = vmax.f32 %v998_v19, 0.0 }
 0x770   :  { %v1015_v40 = vmax.f32 %v993_v22, 0.0  ;;  %v3495_v25 = vpop.f32.mrb[22].mxu1 }
 0x771   :  { %v1008_v29 = vadd.f32 %v3495_v25, %v881_v50  ;;  %v1002_v31 = vpop.f32.mrb[23].mxu1 }
 0x772   :  { %v1003_v20 = vadd.f32 %v1002_v31, %v881_v50  ;;  %3518 = vmatprep.mubr.msk.f32.mxu0 %vm350_vm2, %v1015_v40 }
 0x773   :  { %3519 = vmatmul.mubr.msk.f32.gmra.mrb[20].mxu0 %vm350_vm2, %v1016_v44  ;;  %v1018_v34 = vmax.f32 %v1008_v29, 0.0  ;;  %v1407_v44 = vld [vmem:[%s5501_s3 + $0x8] sm:$0xff] }
 0x774   :  { %v1017_v33 = vmax.f32 %v1003_v20, 0.0  ;;  %v1382_v8 = vpop.f32.mrb[24].mxu1 }
 0x775   :  { %v3534_v6 = vpop.f32.mrb[25].mxu1 }
 0x776   :  { %3521 = vmatprep.mubr.msk.f32.mxu0 %vm350_vm2, %v1017_v33 }
 0x777   :  { %3522 = vmatmul.mubr.msk.f32.gmra.mrb[22].mxu0 %vm350_vm2, %v1018_v34 }
 0x778   :  { %v1387_v0 = vpop.f32.mrb[26].mxu1  ;;  %3557 = vmatprep.mubr.msk.f32.mxu0 %vm4239_vm3, %v4240_v37 }
 0x779   :  { %v4754_v1 = vpack.i.bf16 %v1387_v0, %v1382_v8  ;;  %v3537_v35 = vpop.f32.mrb[27].mxu1 }
 0x77b   :  { %4031 = vrot.lane.b32.xlu1 %v4754_v1, %s4235_s12 }
 0x77c   :  { %v1392_v9 = vpop.f32.mrb[28].mxu1 }
 0x77d   :  { %v3540_v52 = vpop.f32.mrb[29].mxu1 }
 0x780   :  { %v1397_v10 = vpop.f32.mrb[30].mxu1 }
 0x781   :  { %v4758_v2 = vpack.i.bf16 %v1397_v10, %v1392_v9  ;;  %v3543_v59 = vpop.f32.mrb[31].mxu1 }
 0x783   :  { %4036 = vrot.lane.b32.xlu0 %v4758_v2, %s4235_s12 }
 0x784   :  { %v4762_v60 = vpop.f32.mrb[32].mxu1 }
 0x785   :  { %v3546_v43 = vpop.f32.mrb[33].mxu1  ;;  %1424 = vrot.lane.b32.xlu1 %v4762_v60, %s4235_s12 }
 0x7ed   :  { %v4032_v17 = vpop.permute.xlu1 %4031 }
 0x7ee   :  { %v4034_v46 = vunpack.i.h.bf16 %v4032_v17  ;;  %v4033_v50 = vunpack.i.l.bf16 %v4032_v17  ;;  %v1410_v17 = vld [vmem:[%s5501_s3 + $0x20] sm:$0xff] }
 0x7f0   :  { %v3889_v53 = vpack.c.bf16 %v4034_v46, %v4033_v50 }
 0x7f2   :  { %3891 = vmatpush3.bf16.xpose.msk.msra.mxu0 %vm4392_vm1, %v3889_v53 }
 0x7f3   :  { %3892 = vmatprep.subr.bf16.mxu0 %v4238_v26 }
 0x7f5   :  { %v4037_v54 = vpop.permute.xlu0 %4036 }
 0x7f6   :  { %v4039_v55 = vunpack.i.h.bf16 %v4037_v54  ;;  %v4038_v56 = vunpack.i.l.bf16 %v4037_v54 }
 0x7f7   :  { %v1425_v57 = vpop.permute.xlu1 %1424 }
 0x7f8   :  { %v3893_v47 = vpack.c.bf16 %v4039_v55, %v4038_v56 }
 0x7fa   :  { %3895 = vmatpush3.bf16.xpose.msk.msra.mxu0 %vm4392_vm1, %v3893_v47 }
 0x7fb   :  { %3555 = vmatprep.subr.mxu0 %v4240_v37 }
 0x802   :  { %3556 = vmatpush3.xpose.msk.msra.mxu0 %vm51_vm0, %v1425_v57 }
 0x803   :  { %3902 = vmatprep.subr.bf16.mxu0 %v4238_v26 }
 0x805   :  { %3558 = vmatmul.mubr.msk.f32.vlgmr.msra.gmra.mrb[24].mxu0 %vm51_vm0, %v1382_v8  ;;  %v1408_v8 = vld [vmem:[%s5501_s3 + $0x10] sm:$0xff] }
 0x806   :  { %3560 = vmatprep.mubr.msk.f32.mxu0 %vm4239_vm3, %v4240_v37 }
 0x809   :  { %3561 = vmatmul.mubr.msk.f32.gmra.mrb[26].mxu0 %vm51_vm0, %v1387_v0 }
 0x80a   :  { %3563 = vmatprep.mubr.msk.f32.mxu0 %vm4239_vm3, %v4240_v37 }
 0x80d   :  { %3564 = vmatmul.mubr.msk.f32.gmra.mrb[28].mxu0 %vm51_vm0, %v1392_v9  ;;  %v1409_v9 = vld [vmem:[%s5501_s3 + $0x18] sm:$0xff] }
 0x80e   :  { %3566 = vmatprep.mubr.msk.f32.mxu0 %vm4239_vm3, %v4240_v37 }
 0x811   :  { %3567 = vmatmul.mubr.msk.f32.gmra.mrb[30].mxu0 %vm51_vm0, %v1397_v10 }
 0x812   :  { %3569 = vmatprep.mubr.msk.f32.mxu0 %vm4239_vm3, %v4240_v37 }
 0x815   :  { %3570 = vmatmul.mubr.msk.f32.gmra.mrb[32].mxu0 %vm51_vm0, %v4762_v60 }
 0x816   :  { %3605 = vmatprep.mubr.msk.f32.mxu0 %vm4239_vm3, %v4240_v37 }
 0x83b   :  { %v4790_v58 = vpop.f32.mrb[16].mxu0 }
 0x83c   :  { %v4792_v61 = vpop.f32.mrb[17].mxu0 }
 0x842   :  { %v4794_v62 = vpop.f32.mrb[18].mxu0 }
 0x843   :  { %v4796_v63 = vpop.f32.mrb[19].mxu0 }
 0x846   :  { %v4798_v4 = vpop.f32.mrb[20].mxu0 }
 0x847   :  { %v4800_v7 = vpop.f32.mrb[21].mxu0 }
 0x84a   :  { %v4802_v15 = vpop.f32.mrb[22].mxu0 }
 0x84b   :  { %v4804_v19 = vpop.f32.mrb[23].mxu0 }
 0x8d8   :  { %v1512_v22 = vpop.f32.mrb[24].mxu0 }
 0x8d9   :  { %v1513_v40 = vadd.f32 %v1512_v22, %v1406_v21  ;;  %v3559_v25 = vpop.f32.mrb[25].mxu0 }
 0x8db   :  { %v1537_v29 = vsel %vm1536_vm4, %v1513_v40, -inf }
 0x8dc   :  { %1538 = vmax.xlane.f32.xlu1 %v1537_v29  ;;  %v1517_v31 = vpop.f32.mrb[26].mxu0 }
 0x8dd   :  { %v1518_v20 = vadd.f32 %v1517_v31, %v1407_v44  ;;  %v3562_v33 = vpop.f32.mrb[27].mxu0 }
 0x8df   :  { %v1540_v34 = vsel %vm1536_vm4, %v1518_v20, -inf }
 0x8e0   :  { %1541 = vmax.xlane.f32.xlu0 %v1540_v34  ;;  %v1522_v6 = vpop.f32.mrb[28].mxu0 }
 0x8e1   :  { %v1523_v0 = vadd.f32 %v1522_v6, %v1408_v8  ;;  %v3565_v35 = vpop.f32.mrb[29].mxu0 }
 0x8e3   :  { %v1543_v52 = vsel %vm1536_vm4, %v1523_v0, -inf }
 0x8e4   :  { %1544 = vmax.xlane.f32.xlu0 %v1543_v52  ;;  %v1527_v10 = vpop.f32.mrb[30].mxu0 }
 0x8e5   :  { %v1528_v59 = vadd.f32 %v1527_v10, %v1409_v9  ;;  %v3568_v43 = vpop.f32.mrb[31].mxu0 }
 0x8e7   :  { %v1546_v46 = vsel %vm1536_vm4, %v1528_v59, -inf }
 0x8e8   :  { %1547 = vmax.xlane.f32.xlu1 %v1546_v46  ;;  %v1532_v50 = vpop.f32.mrb[32].mxu0 }
 0x8e9   :  { %v1533_v53 = vadd.f32 %v1532_v50, %v1410_v17  ;;  %v3571_v54 = vpop.f32.mrb[33].mxu0  ;;  %v1029_v50 = vsub.s32 5, %v4605_v36 }
 0x8eb   :  { %v1549_v55 = vsel %vm1536_vm4, %v1533_v53, -inf  ;;  %v1030_v54 = vrot.slane %v4611_v45, %v1029_v50 }
 0x8ec   :  { %1550 = vmax.xlane.f32.xlu0 %v1549_v55 }
 0x969   :  { %v1539_v56 = vpop.xlane.xlu1 %1538 }
 0x96a   :  { %v1552_v47 = vsub.f32 %v1513_v40, %v1539_v56 }
 0x96c   :  { %v1557_v57 = vmul.f32 1.442695, %v1552_v47 }
 0x96d   :  { %v1542_v21 = vpop.xlane.xlu0 %1541 }
 0x96e   :  { %4148 = vpow2.f32 %v1557_v57  ;;  %v1553_v22 = vsub.f32 %v1518_v20, %v1542_v21 }
 0x970   :  { %v1559_v25 = vmul.f32 1.442695, %v1553_v22 }
 0x971   :  { %v1545_v44 = vpop.xlane.xlu0 %1544 }
 0x972   :  { %4150 = vpow2.f32 %v1559_v25  ;;  %v1554_v29 = vsub.f32 %v1523_v0, %v1545_v44 }
 0x974   :  { %v1561_v31 = vmul.f32 1.442695, %v1554_v29 }
 0x975   :  { %v1548_v33 = vpop.xlane.xlu1 %1547 }
 0x976   :  { %4152 = vpow2.f32 %v1561_v31  ;;  %v1555_v8 = vsub.f32 %v1528_v59, %v1548_v33  ;;  %v4050_v59 = vpack.i.bf16 %v4630_v39, %v4625_v18  ;;  %v1132_v18 = vadd.f32 %v4796_v63, %v1030_v54 }
 0x978   :  { %v4826_v34 = vpop.eup %4148  ;;  %v1563_v6 = vmul.f32 1.442695, %v1555_v8  ;;  %v4866_v47 = vadd.f32 %v1132_v18, %v4653_v32  ;;  %v4055_v32 = vpack.i.bf16 %v4647_v28, %v4642_v23  ;;  %v1152_v23 = vadd.f32 %v4804_v19, %v1030_v54 }
 0x979   :  { %v1567_v35 = vsel %vm1536_vm4, %v4826_v34, 0.0  ;;  %v1551_v43 = vpop.xlane.xlu0 %1550 }
 0x97a   :  { %4154 = vpow2.f32 %v1563_v6  ;;  %1568 = vadd.xlane.f32.xlu1 %v1567_v35  ;;  %v1556_v17 = vsub.f32 %v1533_v53, %v1551_v43  ;;  %v1137_v53 = vadd.f32 %v4794_v62, %v1030_v54  ;;  %v1174_v57 = vsel %vm51_vm0, %v4866_v47, 0.0 }
 0x97b   :  { %v4906_v44 = vadd.f32 %v1152_v23, %v4676_v11 }
 0x97c   :  { %v4830_v40 = vpop.eup %4150  ;;  %v1565_v46 = vmul.f32 1.442695, %v1556_v17  ;;  %v4872_v21 = vadd.f32 %v1137_v53, %v4662_v3 }
 0x97d   :  { %v1570_v20 = vsel %vm1536_vm4, %v4830_v40, 0.0 }
 0x97e   :  { %1571 = vadd.xlane.f32.xlu0 %v1570_v20  ;;  %4156 = vpow2.f32 %v1565_v46  ;;  %v1177_v62 = vsel %vm51_vm0, %v4872_v21, 0.0 }
 0x980   :  { %v4834_v9 = vpop.eup %4152 }
 0x981   :  { %v1573_v0 = vsel %vm1536_vm4, %v4834_v9, 0.0 }
 0x982   :  { %1574 = vadd.xlane.f32.xlu1 %v1573_v0 }
 0x984   :  { %v4838_v52 = vpop.eup %4154 }
 0x985   :  { %v1576_v10 = vsel %vm1536_vm4, %v4838_v52, 0.0 }
 0x986   :  { %1577 = vadd.xlane.f32.xlu0 %v1576_v10 }
 0x988   :  { %v4853_v55 = vpop.eup %4156 }
 0x993   :  { %4046 = vrot.lane.b32.xlu1 %v4758_v2, %s4236_s28  ;;  %v1122_v2 = vadd.f32 %v4792_v61, %v1030_v54  ;;  %v1147_v61 = vadd.f32 %v4798_v4, %v1030_v54 }
 0x995   :  { %v4860_v39 = vadd.f32 %v1122_v2, %v4632_v24  ;;  %v1157_v24 = vadd.f32 %v4802_v15, %v1030_v54  ;;  %v4878_v63 = vadd.f32 %v1147_v61, %v4673_v5  ;;  %v1127_v15 = vadd.f32 %v4790_v58, %v1030_v54 }
 0x997   :  { %v1168_v56 = vsel %vm51_vm0, %v4860_v39, 0.0  ;;  %v1183_v3 = vsel %vm51_vm0, %v4878_v63, 0.0  ;;  %v4887_v4 = vadd.f32 %v1157_v24, %v4682_v12  ;;  %v4895_v22 = vadd.f32 %v1127_v15, %v4637_v27 }
 0x998   :  { %v1186_v27 = vsel %vm51_vm0, %v4906_v44, 0.0 }
 0x999   :  { %v1189_v5 = vsel %vm51_vm0, %v4887_v4, 0.0  ;;  %v1171_v28 = vsel %vm51_vm0, %v4895_v22, 0.0 }
 0x99c   :  { %4041 = vrot.lane.b32.xlu0 %v4754_v1, %s4236_s28  ;;  %v1579_v1 = vsel %vm1536_vm4, %v4853_v55, 0.0 }
 0x9a0   :  { %4051 = vrot.lane.b32.xlu0 %v4050_v59, %s4237_s2 }
 0x9b7   :  { %1580 = vadd.xlane.f32.xlu1 %v1579_v1 }
 0x9bf   :  { %1169 = vadd.xlane.f32.xlu0 %v1168_v56 }
 0x9c3   :  { %1175 = vadd.xlane.f32.xlu0 %v1174_v57 }
 0x9c7   :  { %1178 = vadd.xlane.f32.xlu0 %v1177_v62 }
 0x9c8   :  { %1600 = vrot.lane.b32.xlu1 %v4762_v60, %s4236_s28  ;;  %v1142_v60 = vadd.f32 %v4800_v7, %v1030_v54 }
 0x9ca   :  { %v4901_v12 = vadd.f32 %v1142_v60, %v4665_v51 }
 0x9cb   :  { %1184 = vadd.xlane.f32.xlu0 %v1183_v3 }
 0x9cc   :  { %4056 = vrot.lane.b32.xlu1 %v4055_v32, %s4237_s2  ;;  %v1180_v25 = vsel %vm51_vm0, %v4901_v12, 0.0 }
 0x9cf   :  { %1190 = vadd.xlane.f32.xlu0 %v1189_v5 }
 0x9f0   :  { %1172 = vadd.xlane.f32.xlu1 %v1171_v28 }
 0x9f4   :  { %1181 = vadd.xlane.f32.xlu1 %v1180_v25 }
 0x9f8   :  { %1187 = vadd.xlane.f32.xlu1 %v1186_v27 }
 0xa07   :  { %v1569_v58 = vpop.xlane.xlu1 %1568 }
 0xa08   :  { %4158 = vrcp.f32 %v1569_v58 }
 0xa0b   :  { %v1572_v7 = vpop.xlane.xlu0 %1571 }
 0xa0c   :  { %4160 = vrcp.f32 %v1572_v7 }
 0xa0f   :  { %v1575_v19 = vpop.xlane.xlu1 %1574 }
 0xa10   :  { %4162 = vrcp.f32 %v1575_v19 }
 0xa12   :  { %v4159_v46 = vpop.eup %4158 }
 0xa13   :  { %v1578_v29 = vpop.xlane.xlu0 %1577  ;;  %v4047_v31 = vpop.permute.xlu1 %4046  ;;  %v1587_v54 = vmul.f32 %v4159_v46, %v4826_v34 }
 0xa14   :  { %v4049_v6 = vunpack.i.h.bf16 %v4047_v31  ;;  %v4048_v35 = vunpack.i.l.bf16 %v4047_v31  ;;  %4164 = vrcp.f32 %v1578_v29 }
 0xa16   :  { %v3900_v59 = vpack.c.bf16 %v4049_v6, %v4048_v35  ;;  %v4161_v1 = vpop.eup %4160 }
 0xa17   :  { %v4042_v33 = vpop.permute.xlu0 %4041  ;;  %v1588_v18 = vmul.f32 %v4161_v1, %v4830_v40 }
 0xa18   :  { %v4044_v51 = vunpack.i.h.bf16 %v4042_v33  ;;  %v4043_v8 = vunpack.i.l.bf16 %v4042_v33 }
 0xa1a   :  { %v3897_v20 = vpack.c.bf16 %v4044_v51, %v4043_v8  ;;  %v4163_v56 = vpop.eup %4162 }
 0xa1b   :  { %v4052_v0 = vpop.permute.xlu0 %4051  ;;  %v1589_v24 = vmul.f32 %v4163_v56, %v4834_v9 }
 0xa1c   :  { %3898 = vmatpush3.bf16.msra.mxu1 %v3897_v20  ;;  %v4054_v11 = vunpack.i.h.bf16 %v4052_v0  ;;  %v4053_v10 = vunpack.i.l.bf16 %v4052_v0 }
 0xa1d   :  { %3899 = vmatprep.subr.bf16.mxu1 %v4238_v26 }
 0xa1e   :  { %v3903_v43 = vpack.c.bf16 %v4054_v11, %v4053_v10  ;;  %v4165_v62 = vpop.eup %4164 }
 0xa1f   :  { %v1590_v40 = vmul.f32 %v4165_v62, %v4838_v52 }
 0xa20   :  { %3901 = vmatpush3.bf16.msra.mxu1 %v3900_v59  ;;  %3904 = vmatpush3.bf16.msra.mxu0 %v3903_v43 }
 0xa21   :  { %3580 = vmatprep.subr.mxu1 %v4240_v37  ;;  %3905 = vmatprep.subr.bf16.mxu0 %v4238_v26 }
 0xa44   :  { %v1581_v17 = vpop.xlane.xlu1 %1580 }
 0xa45   :  { %4166 = vrcp.f32 %v1581_v17 }
 0xa48   :  { %v1601_v2 = vpop.permute.xlu1 %1600 }
 0xa49   :  { %3581 = vmatpush3.msra.mxu1 %v1601_v2 }
 0xa4a   :  { %3583 = vmatmul.mubr.msk.f32.vlgmr.msra.gmra.mrb[34].mxu1 %vm1536_vm4, %v1587_v54  ;;  %3908 = vmatprep.subr.bf16.mxu1 %v4238_v26 }
 0xa4b   :  { %3585 = vmatprep.mubr.msk.f32.mxu1 %vm4239_vm3, %v4240_v37 }
 0xa4c   :  { %v4057_v53 = vpop.permute.xlu1 %4056  ;;  %v1170_v58 = vpop.xlane.xlu0 %1169 }
 0xa4d   :  { %v4059_v61 = vunpack.i.h.bf16 %v4057_v53  ;;  %v4058_v57 = vunpack.i.l.bf16 %v4057_v53  ;;  %v1192_v11 = vmul.f32 0.03125, %v1170_v58 }
 0xa4e   :  { %3586 = vmatmul.mubr.msk.f32.gmra.mrb[36].mxu1 %vm1536_vm4, %v1588_v18 }
 0xa4f   :  { %3588 = vmatprep.mubr.msk.f32.mxu1 %vm4239_vm3, %v4240_v37  ;;  %v3906_v34 = vpack.c.bf16 %v4059_v61, %v4058_v57  ;;  %v4167_v32 = vpop.eup %4166  ;;  %v4964_v54 = vsub.f32 %v4860_v39, %v1192_v11 }
 0xa50   :  { %v1591_v3 = vmul.f32 %v4167_v32, %v4853_v55  ;;  %v1176_v7 = vpop.xlane.xlu0 %1175 }
 0xa51   :  { %3907 = vmatpush3.bf16.msra.mxu0 %v3906_v34  ;;  %v1208_v34 = vmul.f32 %v4964_v54, %v4964_v54 }
 0xa52   :  { %3589 = vmatmul.mubr.msk.f32.gmra.mrb[38].mxu1 %vm1536_vm4, %v1589_v24 }
 0xa53   :  { %3591 = vmatprep.mubr.msk.f32.mxu1 %vm4239_vm3, %v4240_v37 }
 0xa54   :  { %v1179_v51 = vpop.xlane.xlu0 %1178 }
 0xa55   :  { %v1195_v2 = vmul.f32 0.03125, %v1179_v51  ;;  %v5023_v51 = vld [vmem:[%s5494_s5 + $0x50] sm:$0xff] }
 0xa56   :  { %3592 = vmatmul.mubr.msk.f32.gmra.mrb[40].mxu1 %vm1536_vm4, %v1590_v40 }
 0xa57   :  { %3594 = vmatprep.mubr.msk.f32.mxu1 %vm4239_vm3, %v4240_v37  ;;  %v4977_v39 = vsub.f32 %v4872_v21, %v1195_v2 }
 0xa58   :  { %v1185_v43 = vpop.xlane.xlu0 %1184 }
 0xa59   :  { %v1197_v57 = vmul.f32 0.03125, %v1185_v43 }
 0xa5a   :  { %3595 = vmatmul.mubr.msk.f32.gmra.mrb[42].mxu1 %vm1536_vm4, %v1591_v3 }
 0xa5b   :  { %3628 = vmatprep.mubr.msk.f32.mxu1 %vm4239_vm3, %v4240_v37 }
 0xa5c   :  { %v1191_v24 = vpop.xlane.xlu0 %1190 }
 0xa7d   :  { %v1173_v19 = vpop.xlane.xlu1 %1172 }
 0xa7e   :  { %v1193_v8 = vmul.f32 0.03125, %v1173_v19 }
 0xa80   :  { %v4956_v10 = vsub.f32 %v4895_v22, %v1193_v8  ;;  %v5028_v8 = vld [vmem:[%s5494_s5 + $0x58] sm:$0xff] }
 0xa81   :  { %v1182_v1 = vpop.xlane.xlu1 %1181 }
 0xa82   :  { %v1209_v18 = vmul.f32 %v4956_v10, %v4956_v10  ;;  %v1196_v62 = vmul.f32 0.03125, %v1182_v1 }
 0xa84   :  { %v1219_v32 = vsel %vm51_vm0, %v1209_v18, 0.0 }
 0xb1d   :  { %v1688_v9 = vpop.f32.mrb[34].mxu1 }
 0xb1e   :  { %v3584_v5 = vpop.f32.mrb[35].mxu1  ;;  %3606 = vmatmul.mubr.msk.f32.vlgmr.msra.gmra.mrb[34].mxu0 %vm51_vm0, %v1688_v9  ;;  %v4988_v9 = vsub.f32 %v4878_v63, %v1197_v57 }
 0xb1f   :  { %3608 = vmatprep.mubr.msk.f32.mxu0 %vm4239_vm3, %v4240_v37  ;;  %v1216_v5 = vsel %vm51_vm0, %v1208_v34, 0.0 }
 0xb20   :  { %v1213_v58 = vmul.f32 %v4988_v9, %v4988_v9 }
 0xb21   :  { %v1693_v52 = vpop.f32.mrb[36].mxu1 }
 0xb22   :  { %v3587_v15 = vpop.f32.mrb[37].mxu1  ;;  %3609 = vmatmul.mubr.msk.f32.gmra.mrb[36].mxu0 %vm51_vm0, %v1693_v52  ;;  %v1231_v19 = vsel %vm51_vm0, %v1213_v58, 0.0 }
 0xb23   :  { %3611 = vmatprep.mubr.msk.f32.mxu0 %vm4239_vm3, %v4240_v37  ;;  %v1211_v15 = vmul.f32 %v4977_v39, %v4977_v39 }
 0xb25   :  { %v1698_v55 = vpop.f32.mrb[38].mxu1 }
 0xb26   :  { %v3590_v60 = vpop.f32.mrb[39].mxu1  ;;  %3612 = vmatmul.mubr.msk.f32.gmra.mrb[38].mxu0 %vm51_vm0, %v1698_v55  ;;  %v1199_v55 = vmul.f32 0.03125, %v1191_v24 }
 0xb27   :  { %3614 = vmatprep.mubr.msk.f32.mxu0 %vm4239_vm3, %v4240_v37  ;;  %v4996_v60 = vsub.f32 %v4901_v12, %v1196_v62 }
 0xb29   :  { %v1703_v23 = vpop.f32.mrb[40].mxu1  ;;  %v1212_v12 = vmul.f32 %v4996_v60, %v4996_v60 }
 0xb2a   :  { %v3593_v28 = vpop.f32.mrb[41].mxu1  ;;  %3615 = vmatmul.mubr.msk.f32.gmra.mrb[40].mxu0 %vm51_vm0, %v1703_v23 }
 0xb2b   :  { %3617 = vmatprep.mubr.msk.f32.mxu0 %vm4239_vm3, %v4240_v37  ;;  %v1225_v28 = vsel %vm51_vm0, %v1211_v15, 0.0 }
 0xb2d   :  { %v1708_v25 = vpop.f32.mrb[42].mxu1 }
 0xb2e   :  { %v3596_v27 = vpop.f32.mrb[43].mxu1  ;;  %3618 = vmatmul.mubr.msk.f32.gmra.mrb[42].mxu0 %vm51_vm0, %v1708_v25  ;;  %v5003_v25 = vsub.f32 %v4887_v4, %v1199_v55 }
 0xbf1   :  { %v1809_v29 = vpop.f32.mrb[34].mxu0 }
 0xbf2   :  { %v4948_v31 = vadd.f32 %v1809_v29, %v4691_v16  ;;  %v3607_v33 = vpop.f32.mrb[35].mxu0  ;;  %v1215_v29 = vmul.f32 %v5003_v25, %v5003_v25 }
 0xbf4   :  { %v1838_v6 = vsel %vm51_vm0, %v4948_v31, 0.0 }
 0xbf5   :  { %v1814_v35 = vpop.f32.mrb[36].mxu0  ;;  %1839 = vadd.xlane.f32.xlu1 %v1838_v6  ;;  %v5032_v6 = vpack.i.bf16 %v5028_v8, %v5023_v51 }
 0xbf6   :  { %v4953_v20 = vadd.f32 %v1814_v35, %v4700_v38  ;;  %v3610_v0 = vpop.f32.mrb[37].mxu0  ;;  %v1194_v38 = vmul.f32 0.03125, %v1176_v7  ;;  %v1228_v7 = vsel %vm51_vm0, %v1212_v12, 0.0  ;;  %v5037_v35 = vld [vmem:[%s5494_s5 + $0x40] sm:$0xff] }
 0xbf7   :  { %v5042_v0 = vld [vmem:[%s5494_s5 + $0x48] sm:$0xff] }
 0xbf8   :  { %v1841_v16 = vsel %vm51_vm0, %v4953_v20, 0.0  ;;  %v4974_v61 = vsub.f32 %v4866_v47, %v1194_v38  ;;  %v5048_v11 = vpack.i.bf16 %v5042_v0, %v5037_v35 }
 0xbf9   :  { %1842 = vadd.xlane.f32.xlu0 %v1841_v16  ;;  %v1819_v59 = vpop.f32.mrb[38].mxu0 }
 0xbfa   :  { %v4961_v17 = vadd.f32 %v1819_v59, %v4709_v13  ;;  %v3613_v46 = vpop.f32.mrb[39].mxu0  ;;  %v1210_v52 = vmul.f32 %v4974_v61, %v4974_v61 }
 0xbfc   :  { %v1844_v22 = vsel %vm51_vm0, %v4961_v17, 0.0  ;;  %v1222_v63 = vsel %vm51_vm0, %v1210_v52, 0.0 }
 0xbfd   :  { %v1824_v53 = vpop.f32.mrb[40].mxu0  ;;  %1845 = vadd.xlane.f32.xlu1 %v1844_v22 }
 0xbfe   :  { %v4971_v56 = vadd.f32 %v1824_v53, %v4718_v14  ;;  %v3616_v13 = vpop.f32.mrb[41].mxu0  ;;  %v1188_v14 = vpop.xlane.xlu1 %1187 }
 0xbff   :  { %v1198_v23 = vmul.f32 0.03125, %v1188_v14 }
 0xc00   :  { %v1847_v40 = vsel %vm51_vm0, %v4971_v56, 0.0 }
 0xc01   :  { %1848 = vadd.xlane.f32.xlu0 %v1847_v40  ;;  %v1829_v3 = vpop.f32.mrb[42].mxu0  ;;  %1220 = vadd.xlane.f32.xlu1 %v1219_v32  ;;  %v5006_v27 = vsub.f32 %v4906_v44, %v1198_v23  ;;  %v1237_v44 = vsel %vm51_vm0, %v1215_v29, 0.0 }
 0xc02   :  { %v4985_v47 = vadd.f32 %v1829_v3, %v4727_v42  ;;  %v3619_v21 = vpop.f32.mrb[43].mxu0 }
 0xc03   :  { %v1214_v4 = vmul.f32 %v5006_v27, %v5006_v27 }
 0xc04   :  { %v1850_v42 = vsel %vm51_vm0, %v4985_v47, 0.0 }
 0xc05   :  { %1217 = vadd.xlane.f32.xlu0 %v1216_v5  ;;  %1851 = vadd.xlane.f32.xlu1 %v1850_v42  ;;  %v1234_v33 = vsel %vm51_vm0, %v1214_v4, 0.0 }
 0xc09   :  { %1223 = vadd.xlane.f32.xlu0 %v1222_v63  ;;  %1226 = vadd.xlane.f32.xlu1 %v1225_v28 }
 0xc0d   :  { %1229 = vadd.xlane.f32.xlu0 %v1228_v7  ;;  %1232 = vadd.xlane.f32.xlu1 %v1231_v19 }
 0xc11   :  { %1238 = vadd.xlane.f32.xlu1 %v1237_v44  ;;  %1235 = vadd.xlane.f32.xlu0 %v1234_v33 }
 0xc22   :  { %4066 = vrot.lane.b32.xlu1 %v5032_v6, %s4235_s12 }
 0xc27   :  { %4061 = vrot.lane.b32.xlu0 %v5048_v11, %s4235_s12 }
 0xc82   :  { %v1840_v16 = vpop.xlane.xlu1 %1839 }
 0xc83   :  { %v1853_v59 = vmul.f32 0.03125, %v1840_v16 }
 0xc85   :  { %v5053_v43 = vsub.f32 %v4948_v31, %v1853_v59 }
 0xc86   :  { %v1843_v46 = vpop.xlane.xlu0 %1842 }
 0xc87   :  { %v1854_v38 = vmul.f32 0.03125, %v1843_v46  ;;  %v1863_v2 = vmul.f32 %v5053_v43, %v5053_v43  ;;  %v1274_v46 = vsub.s32 2, %v4605_v36 }
 0xc89   :  { %v5058_v1 = vsub.f32 %v4953_v20, %v1854_v38  ;;  %v1868_v22 = vsel %vm51_vm0, %v1863_v2, 0.0 }
 0xc8a   :  { %1869 = vadd.xlane.f32.xlu1 %v1868_v22  ;;  %v1846_v18 = vpop.xlane.xlu1 %1845 }
 0xc8b   :  { %v1855_v53 = vmul.f32 0.03125, %v1846_v18  ;;  %v1864_v13 = vmul.f32 %v5058_v1, %v5058_v1 }
 0xc8d   :  { %v5064_v57 = vsub.f32 %v4961_v17, %v1855_v53  ;;  %v1871_v31 = vsel %vm51_vm0, %v1864_v13, 0.0  ;;  %v1286_v53 = vsub.s32 3, %v4605_v36 }
 0xc8e   :  { %v1849_v34 = vpop.xlane.xlu0 %1848  ;;  %1872 = vadd.xlane.f32.xlu0 %v1871_v31  ;;  %v1221_v24 = vpop.xlane.xlu1 %1220 }
 0xc8f   :  { %v1856_v62 = vmul.f32 0.03125, %v1849_v34  ;;  %v1865_v20 = vmul.f32 %v5064_v57, %v5064_v57  ;;  %v1241_v40 = vmul.f32 0.03125, %v1221_v24 }
 0xc91   :  { %v5070_v32 = vsub.f32 %v4971_v56, %v1856_v62  ;;  %v1874_v14 = vsel %vm51_vm0, %v1865_v20, 0.0  ;;  %v1249_v15 = vadd.f32 1e-05, %v1241_v40  ;;  %v1275_v62 = vrot.slane %v4611_v45, %v1274_v46 }
 0xc92   :  { %v1218_v3 = vpop.xlane.xlu0 %1217  ;;  %1875 = vadd.xlane.f32.xlu0 %v1874_v14  ;;  %v1852_v21 = vpop.xlane.xlu1 %1851 }
 0xc93   :  { %v1240_v17 = vmul.f32 0.03125, %v1218_v3  ;;  %v1857_v5 = vmul.f32 0.03125, %v1852_v21  ;;  %v1866_v52 = vmul.f32 %v5070_v32, %v5070_v32 }
 0xc95   :  { %v1248_v55 = vadd.f32 1e-05, %v1240_v17  ;;  %v5076_v23 = vsub.f32 %v4985_v47, %v1857_v5  ;;  %v1877_v42 = vsel %vm51_vm0, %v1866_v52, 0.0  ;;  %v5091_v5 = vld [vmem:[%s5499_s8] sm:$0xff] }
 0xc96   :  { %v1224_v63 = vpop.xlane.xlu0 %1223  ;;  %1878 = vadd.xlane.f32.xlu1 %v1877_v42  ;;  %v1227_v56 = vpop.xlane.xlu1 %1226  ;;  %v1287_v52 = vrot.slane %v5091_v5, %v1286_v53 }
 0xc97   :  { %4168 = vrsqrt.f32 %v1248_v55  ;;  %v1242_v28 = vmul.f32 0.03125, %v1224_v63  ;;  %v1243_v12 = vmul.f32 0.03125, %v1227_v56  ;;  %v1867_v58 = vmul.f32 %v5076_v23, %v5076_v23 }
 0xc98   :  { %4170 = vrsqrt.f32 %v1249_v15  ;;  %v3909_v63 = vpack.c.bf16 %v5042_v0, %v5037_v35 }
 0xc99   :  { %v1250_v7 = vadd.f32 1e-05, %v1242_v28  ;;  %v1251_v19 = vadd.f32 1e-05, %v1243_v12  ;;  %v1880_v29 = vsel %vm51_vm0, %v1867_v58, 0.0 }
 0xc9a   :  { %v1230_v4 = vpop.xlane.xlu0 %1229  ;;  %1881 = vadd.xlane.f32.xlu0 %v1880_v29  ;;  %v1233_v47 = vpop.xlane.xlu1 %1232  ;;  %3910 = vmatpush3.bf16.msra.mxu1 %v3909_v63 }
 0xc9b   :  { %4172 = vrsqrt.f32 %v1250_v7  ;;  %v1244_v44 = vmul.f32 0.03125, %v1230_v4  ;;  %v1245_v33 = vmul.f32 0.03125, %v1233_v47  ;;  %3911 = vmatprep.subr.bf16.mxu1 %v4238_v26 }
 0xc9c   :  { %4174 = vrsqrt.f32 %v1251_v19 }
 0xc9d   :  { %v1252_v16 = vadd.f32 1e-05, %v1244_v44  ;;  %v1253_v59 = vadd.f32 1e-05, %v1245_v33 }
 0xc9e   :  { %v1236_v38 = vpop.xlane.xlu0 %1235  ;;  %v1239_v2 = vpop.xlane.xlu1 %1238 }
 0xc9f   :  { %4176 = vrsqrt.f32 %v1252_v16  ;;  %v1246_v22 = vmul.f32 0.03125, %v1236_v38  ;;  %v1247_v18 = vmul.f32 0.03125, %v1239_v2 }
 0xca0   :  { %4178 = vrsqrt.f32 %v1253_v59 }
 0xca1   :  { %v4169_v13 = vpop.eup %4168  ;;  %v1254_v31 = vadd.f32 1e-05, %v1246_v22  ;;  %v1255_v34 = vadd.f32 1e-05, %v1247_v18 }
 0xca2   :  { %v4171_v24 = vpop.eup %4170  ;;  %v4062_v20 = vpop.permute.xlu0 %4061  ;;  %v1264_v14 = vmul.f32 %v4169_v13, %v4964_v54 }
 0xca3   :  { %v4067_v40 = vpop.permute.xlu1 %4066  ;;  %4180 = vrsqrt.f32 %v1254_v31  ;;  %v4064_v3 = vunpack.i.h.bf16 %v4062_v20  ;;  %v4063_v21 = vunpack.i.l.bf16 %v4062_v20  ;;  %v1265_v42 = vmul.f32 %v4171_v24, %v4956_v10 }
 0xca4   :  { %v4069_v17 = vunpack.i.h.bf16 %v4067_v40  ;;  %4182 = vrsqrt.f32 %v1255_v34  ;;  %v4068_v15 = vunpack.i.l.bf16 %v4067_v40  ;;  %v1276_v45 = vmul.f32 %v1275_v62, %v1264_v14 }
 0xca5   :  { %v4173_v55 = vpop.eup %4172  ;;  %v3914_v54 = vpack.c.bf16 %v4064_v3, %v4063_v21  ;;  %v1277_v19 = vmul.f32 %v1275_v62, %v1265_v42  ;;  %v3912_v10 = vpack.c.bf16 %v5028_v8, %v5023_v51  ;;  %v1905_v3 = vsub.s32 6, %v4605_v36 }
 0xca6   :  { %v4175_v56 = vpop.eup %4174  ;;  %v3918_v28 = vpack.c.bf16 %v4069_v17, %v4068_v15  ;;  %v1288_v12 = vadd.f32 %v1287_v52, %v1276_v45  ;;  %v1266_v58 = vmul.f32 %v4173_v55, %v4974_v61  ;;  %v1914_v17 = vsub.s32 7, %v4605_v36 }
 0xca7   :  { %3915 = vmatprep.subr.bf16.mxu0 %v3914_v54  ;;  %v1267_v29 = vmul.f32 %v4175_v56, %v4977_v39  ;;  %3913 = vmatpush3.bf16.msra.mxu1 %v3912_v10  ;;  %v1289_v47 = vadd.f32 %v1287_v52, %v1277_v19  ;;  %v1906_v45 = vrot.slane %v5091_v5, %v1905_v3 }
 0xca8   :  { %3917 = vmatpush3.bf16.msra.mxu0 %v3914_v54  ;;  %3651 = vmatprep.mubr.msk.f32.mxu0 %vm51_vm0, %v1288_v12  ;;  %v1278_v0 = vmul.f32 %v1275_v62, %v1266_v58  ;;  %v1915_v54 = vrot.slane %v5091_v5, %v1914_v17 }
 0xca9   :  { %v4177_v7 = vpop.eup %4176  ;;  %3919 = vmatprep.subr.bf16.mxu0 %v3918_v28  ;;  %3922 = vmatprep.subr.bf16.mxu1 %v4238_v26  ;;  %v1279_v44 = vmul.f32 %v1275_v62, %v1267_v29 }
 0xcaa   :  { %v4179_v35 = vpop.eup %4178  ;;  %v1268_v4 = vmul.f32 %v4177_v7, %v4996_v60  ;;  %v1290_v16 = vadd.f32 %v1287_v52, %v1278_v0 }
 0xcab   :  { %v1269_v33 = vmul.f32 %v4179_v35, %v4988_v9  ;;  %v1291_v60 = vadd.f32 %v1287_v52, %v1279_v44 }
 0xcac   :  { %3921 = vmatpush3.bf16.msra.mxu0 %v3918_v28  ;;  %v1280_v59 = vmul.f32 %v1275_v62, %v1268_v4 }
 0xcad   :  { %v4181_v61 = vpop.eup %4180  ;;  %3938 = vmatprep.subr.bf16.mxu0 %v4238_v26  ;;  %v1281_v8 = vmul.f32 %v1275_v62, %v1269_v33 }
 0xcae   :  { %v4183_v39 = vpop.eup %4182  ;;  %v1270_v51 = vmul.f32 %v4181_v61, %v5006_v27  ;;  %v1292_v2 = vadd.f32 %v1287_v52, %v1280_v59 }
 0xcaf   :  { %3652 = vmatmul.mubr.msk.f32.vlgmr.msra.gmra.mrb[44].mxu0 %vm51_vm0, %v1289_v47  ;;  %v1271_v38 = vmul.f32 %v4183_v39, %v5003_v25  ;;  %v1293_v9 = vadd.f32 %v1287_v52, %v1281_v8 }
 0xcb0   :  { %3654 = vmatprep.mubr.msk.f32.mxu0 %vm51_vm0, %v1290_v16  ;;  %v1282_v22 = vmul.f32 %v1275_v62, %v1270_v51 }
 0xcb1   :  { %v1283_v18 = vmul.f32 %v1275_v62, %v1271_v38 }
 0xcb2   :  { %v1294_v13 = vadd.f32 %v1287_v52, %v1282_v22 }
 0xcb3   :  { %3655 = vmatmul.mubr.msk.f32.gmra.mrb[46].mxu0 %vm51_vm0, %v1291_v60  ;;  %v1295_v27 = vadd.f32 %v1287_v52, %v1283_v18 }
 0xcb4   :  { %3657 = vmatprep.mubr.msk.f32.mxu0 %vm51_vm0, %v1292_v2 }
 0xcb7   :  { %3658 = vmatmul.mubr.msk.f32.gmra.mrb[48].mxu0 %vm51_vm0, %v1293_v9 }
 0xcb8   :  { %3660 = vmatprep.mubr.msk.f32.mxu0 %vm51_vm0, %v1294_v13 }
 0xcbb   :  { %3661 = vmatmul.mubr.msk.f32.gmra.mrb[50].mxu0 %vm51_vm0, %v1295_v27 }
 0xcbc   :  { %3710 = vmatprep.mubr.msk.f32.mxu0 %vm4239_vm3, %v4240_v37 }
 0xd17   :  { %v1870_v25 = vpop.xlane.xlu1 %1869 }
 0xd18   :  { %v1883_v31 = vmul.f32 0.03125, %v1870_v25 }
 0xd1a   :  { %v1888_v34 = vadd.f32 1e-05, %v1883_v31 }
 0xd1b   :  { %v1873_v24 = vpop.xlane.xlu0 %1872 }
 0xd1c   :  { %4184 = vrsqrt.f32 %v1888_v34  ;;  %v1884_v20 = vmul.f32 0.03125, %v1873_v24 }
 0xd1e   :  { %v1889_v40 = vadd.f32 1e-05, %v1884_v20 }
 0xd1f   :  { %v1876_v14 = vpop.xlane.xlu0 %1875 }
 0xd20   :  { %4186 = vrsqrt.f32 %v1889_v40  ;;  %v1885_v62 = vmul.f32 0.03125, %v1876_v14 }
 0xd22   :  { %v1890_v21 = vadd.f32 1e-05, %v1885_v62 }
 0xd23   :  { %v1879_v52 = vpop.xlane.xlu1 %1878 }
 0xd24   :  { %4188 = vrsqrt.f32 %v1890_v21  ;;  %v1886_v15 = vmul.f32 0.03125, %v1879_v52 }
 0xd26   :  { %v4185_v55 = vpop.eup %4184  ;;  %v1891_v42 = vadd.f32 1e-05, %v1886_v15  ;;  %v2176_v15 = vld [vmem:[%s5502_s4] sm:$0xff] }
 0xd27   :  { %v1898_v63 = vmul.f32 %v4185_v55, %v5053_v43  ;;  %v1882_v56 = vpop.xlane.xlu0 %1881 }
 0xd28   :  { %4190 = vrsqrt.f32 %v1891_v42  ;;  %v1887_v28 = vmul.f32 0.03125, %v1882_v56 }
 0xd29   :  { %v1907_v12 = vmul.f32 %v1906_v45, %v1898_v63 }
 0xd2a   :  { %v4187_v58 = vpop.eup %4186  ;;  %v1892_v7 = vadd.f32 1e-05, %v1887_v28 }
 0xd2b   :  { %v5125_v19 = vadd.f32 %v1915_v54, %v1907_v12  ;;  %v1899_v29 = vmul.f32 %v4187_v58, %v5058_v1  ;;  %v2178_v58 = vld [vmem:[%s5502_s4 + $0x10] sm:$0xff] }
 0xd2c   :  { %4192 = vrsqrt.f32 %v1892_v7 }
 0xd2d   :  { %3629 = vmatmul.mubr.msk.f32.vlgmr.msra.gmra.mrb[44].mxu1 %vm51_vm0, %v5125_v19  ;;  %v1908_v10 = vmul.f32 %v1906_v45, %v1899_v29 }
 0xd2e   :  { %v4189_v35 = vpop.eup %4188  ;;  %3631 = vmatprep.mubr.msk.f32.mxu1 %vm4239_vm3, %v4240_v37 }
 0xd2f   :  { %v5132_v43 = vadd.f32 %v1915_v54, %v1908_v10  ;;  %v1900_v5 = vmul.f32 %v4189_v35, %v5064_v57 }
 0xd31   :  { %3632 = vmatmul.mubr.msk.f32.gmra.mrb[46].mxu1 %vm51_vm0, %v5132_v43  ;;  %v1909_v0 = vmul.f32 %v1906_v45, %v1900_v5  ;;  %v2179_v5 = vld [vmem:[%s5502_s4 + $0x18] sm:$0xff] }
 0xd32   :  { %v4191_v4 = vpop.eup %4190  ;;  %3634 = vmatprep.mubr.msk.f32.mxu1 %vm4239_vm3, %v4240_v37 }
 0xd33   :  { %v5139_v1 = vadd.f32 %v1915_v54, %v1909_v0  ;;  %v1901_v61 = vmul.f32 %v4191_v4, %v5070_v32 }
 0xd35   :  { %3635 = vmatmul.mubr.msk.f32.gmra.mrb[48].mxu1 %vm51_vm0, %v5139_v1  ;;  %v1910_v47 = vmul.f32 %v1906_v45, %v1901_v61 }
 0xd36   :  { %v4193_v44 = vpop.eup %4192  ;;  %3637 = vmatprep.mubr.msk.f32.mxu1 %vm4239_vm3, %v4240_v37 }
 0xd37   :  { %v5146_v57 = vadd.f32 %v1915_v54, %v1910_v47  ;;  %v1902_v33 = vmul.f32 %v4193_v44, %v5076_v23  ;;  %v2180_v44 = vld [vmem:[%s5502_s4 + $0x20] sm:$0xff] }
 0xd39   :  { %3638 = vmatmul.mubr.msk.f32.gmra.mrb[50].mxu1 %vm51_vm0, %v5146_v57  ;;  %v1911_v39 = vmul.f32 %v1906_v45, %v1902_v33 }
 0xd3a   :  { %3640 = vmatprep.mubr.msk.f32.mxu1 %vm4239_vm3, %v4240_v37 }
 0xd3b   :  { %v5153_v32 = vadd.f32 %v1915_v54, %v1911_v39  ;;  %v2177_v54 = vld [vmem:[%s5502_s4 + $0x8] sm:$0xff] }
 0xd3d   :  { %3641 = vmatmul.mubr.msk.f32.gmra.mrb[52].mxu1 %vm51_vm0, %v5153_v32 }
 0xd3e   :  { %3679 = vmatprep.mubr.msk.f32.mxu1 %vm4239_vm3, %v4240_v37 }
 0xd82   :  { %v5159_v16 = vpop.f32.mrb[44].mxu0 }
 0xd83   :  { %v5161_v59 = vpop.f32.mrb[45].mxu0 }
 0xd84   :  { %v4070_v23 = vpack.i.bf16 %v5159_v16, %v5161_v59  ;;  %v3923_v51 = vpack.c.bf16 %v5159_v16, %v5161_v59 }
 0xd86   :  { %v5167_v60 = vpop.f32.mrb[46].mxu0  ;;  %3925 = vmatpush3.bf16.xpose.msk.msra.mxu1 %vm4392_vm1, %v3923_v51 }
 0xd87   :  { %v5171_v8 = vpop.f32.mrb[47].mxu0  ;;  %3926 = vmatprep.subr.bf16.mxu1 %v4238_v26 }
 0xd88   :  { %v4075_v38 = vpack.i.bf16 %v5167_v60, %v5171_v8  ;;  %v3927_v2 = vpack.c.bf16 %v5167_v60, %v5171_v8 }
 0xd8a   :  { %v5178_v22 = vpop.f32.mrb[48].mxu0 }
 0xd8b   :  { %v5180_v9 = vpop.f32.mrb[49].mxu0 }
 0xd8c   :  { %v4080_v18 = vpack.i.bf16 %v5178_v22, %v5180_v9  ;;  %v3931_v13 = vpack.c.bf16 %v5178_v22, %v5180_v9 }
 0xd8e   :  { %v5186_v27 = vpop.f32.mrb[50].mxu0  ;;  %3929 = vmatpush3.bf16.xpose.msk.msra.mxu1 %vm4392_vm1, %v3927_v2 }
 0xd8f   :  { %v5190_v25 = vpop.f32.mrb[51].mxu0  ;;  %3930 = vmatprep.subr.bf16.mxu1 %v4238_v26 }
 0xd90   :  { %v4085_v31 = vpack.i.bf16 %v5186_v27, %v5190_v25  ;;  %v3935_v34 = vpack.c.bf16 %v5186_v27, %v5190_v25 }
 0xd96   :  { %3933 = vmatpush3.bf16.xpose.msk.msra.mxu1 %vm4392_vm1, %v3931_v13 }
 0xd97   :  { %3934 = vmatprep.subr.bf16.mxu1 %v4238_v26 }
 0xd9e   :  { %3937 = vmatpush3.bf16.xpose.msk.msra.mxu1 %vm4392_vm1, %v3935_v34 }
 0xd9f   :  { %3956 = vmatprep.subr.bf16.mxu1 %v4238_v26 }
 0xe00   :  { %v2007_v24 = vpop.f32.mrb[44].mxu1 }
 0xe01   :  { %v3630_v20 = vpop.f32.mrb[45].mxu1  ;;  %3680 = vmatmul.mubr.msk.f32.vlgmr.msra.gmra.mrb[54].mxu1 %vm51_vm0, %v2007_v24 }
 0xe02   :  { %3682 = vmatprep.mubr.msk.f32.mxu1 %vm4239_vm3, %v4240_v37 }
 0xe04   :  { %v2012_v40 = vpop.f32.mrb[46].mxu1 }
 0xe05   :  { %v3633_v14 = vpop.f32.mrb[47].mxu1  ;;  %3683 = vmatmul.mubr.msk.f32.gmra.mrb[56].mxu1 %vm51_vm0, %v2012_v40 }
 0xe06   :  { %3685 = vmatprep.mubr.msk.f32.mxu1 %vm4239_vm3, %v4240_v37 }
 0xe08   :  { %v2017_v62 = vpop.f32.mrb[48].mxu1 }
 0xe09   :  { %v3636_v3 = vpop.f32.mrb[49].mxu1  ;;  %3686 = vmatmul.mubr.msk.f32.gmra.mrb[58].mxu1 %vm51_vm0, %v2017_v62 }
 0xe0a   :  { %3688 = vmatprep.mubr.msk.f32.mxu1 %vm4239_vm3, %v4240_v37 }
 0xe0c   :  { %v2022_v30 = vpop.f32.mrb[50].mxu1 }
 0xe0d   :  { %v3639_v21 = vpop.f32.mrb[51].mxu1  ;;  %3689 = vmatmul.mubr.msk.f32.gmra.mrb[60].mxu1 %vm51_vm0, %v2022_v30 }
 0xe0e   :  { %3691 = vmatprep.mubr.msk.f32.mxu1 %vm4239_vm3, %v4240_v37 }
 0xe10   :  { %v2027_v17 = vpop.f32.mrb[52].mxu1 }
 0xe11   :  { %v3642_v52 = vpop.f32.mrb[53].mxu1  ;;  %3692 = vmatmul.mubr.msk.f32.gmra.mrb[62].mxu1 %vm51_vm0, %v2027_v17 }
 0xe12   :  { %3756 = vmatprep.mubr.msk.f32.mxu1 %vm4239_vm3, %v4240_v37 }
 0xed4   :  { %v2286_v45 = vpop.f32.mrb[54].mxu1 }
 0xed5   :  { %v2287_v55 = vadd.f32 %v2286_v45, %v2176_v15  ;;  %v3681_v42 = vpop.f32.mrb[55].mxu1 }
 0xed7   :  { %v2310_v63 = vsel %vm350_vm2, %v2287_v55, -inf }
 0xed8   :  { %2311 = vmax.xlane.f32.xlu1 %v2310_v63  ;;  %v2291_v56 = vpop.f32.mrb[56].mxu1 }
 0xed9   :  { %v2292_v28 = vadd.f32 %v2291_v56, %v2177_v54  ;;  %v3684_v12 = vpop.f32.mrb[57].mxu1 }
 0xedb   :  { %v2313_v7 = vsel %vm350_vm2, %v2292_v28, -inf }
 0xedc   :  { %2314 = vmax.xlane.f32.xlu0 %v2313_v7  ;;  %v2296_v29 = vpop.f32.mrb[58].mxu1 }
 0xedd   :  { %v2297_v10 = vadd.f32 %v2296_v29, %v2178_v58  ;;  %v3687_v35 = vpop.f32.mrb[59].mxu1 }
 0xedf   :  { %v2316_v0 = vsel %vm350_vm2, %v2297_v10, -inf }
 0xee0   :  { %2317 = vmax.xlane.f32.xlu1 %v2316_v0  ;;  %v2301_v4 = vpop.f32.mrb[60].mxu1 }
 0xee1   :  { %v2302_v61 = vadd.f32 %v2301_v4, %v2179_v5  ;;  %v3690_v47 = vpop.f32.mrb[61].mxu1 }
 0xee3   :  { %v2319_v33 = vsel %vm350_vm2, %v2302_v61, -inf }
 0xee4   :  { %2320 = vmax.xlane.f32.xlu0 %v2319_v33  ;;  %v2306_v39 = vpop.f32.mrb[62].mxu1 }
 0xee5   :  { %v2307_v51 = vadd.f32 %v2306_v39, %v2180_v44  ;;  %v3693_v2 = vpop.f32.mrb[63].mxu1 }
 0xee7   :  { %v2322_v13 = vsel %vm350_vm2, %v2307_v51, -inf }
 0xee8   :  { %2323 = vmax.xlane.f32.xlu1 %v2322_v13 }
 0xf65   :  { %v2312_v34 = vpop.xlane.xlu1 %2311 }
 0xf66   :  { %v2325_v24 = vsub.f32 %v2287_v55, %v2312_v34 }
 0xf68   :  { %v2330_v20 = vmul.f32 1.442695, %v2325_v24 }
 0xf69   :  { %v2315_v40 = vpop.xlane.xlu0 %2314 }
 0xf6a   :  { %4194 = vpow2.f32 %v2330_v20  ;;  %v2326_v14 = vsub.f32 %v2292_v28, %v2315_v40 }
 0xf6c   :  { %v2332_v62 = vmul.f32 1.442695, %v2326_v14 }
 0xf6d   :  { %v2318_v52 = vpop.xlane.xlu1 %2317 }
 0xf6e   :  { %4196 = vpow2.f32 %v2332_v62  ;;  %v2327_v15 = vsub.f32 %v2297_v10, %v2318_v52 }
 0xf70   :  { %v2334_v54 = vmul.f32 1.442695, %v2327_v15 }
 0xf71   :  { %v2321_v45 = vpop.xlane.xlu0 %2320 }
 0xf72   :  { %v2328_v42 = vsub.f32 %v2302_v61, %v2321_v45  ;;  %4198 = vpow2.f32 %v2334_v54 }
 0xf74   :  { %v5238_v3 = vpop.eup %4194  ;;  %v2336_v56 = vmul.f32 1.442695, %v2328_v42 }
 0xf75   :  { %v2340_v30 = vsel %vm350_vm2, %v5238_v3, 0.0  ;;  %v2324_v55 = vpop.xlane.xlu1 %2323 }
 0xf76   :  { %2341 = vadd.xlane.f32.xlu0 %v2340_v30  ;;  %v2329_v63 = vsub.f32 %v2307_v51, %v2324_v55  ;;  %4200 = vpow2.f32 %v2336_v56 }
 0xf78   :  { %v5242_v21 = vpop.eup %4196  ;;  %v2338_v28 = vmul.f32 1.442695, %v2329_v63 }
 0xf79   :  { %v2343_v17 = vsel %vm350_vm2, %v5242_v21, 0.0 }
 0xf7a   :  { %2344 = vadd.xlane.f32.xlu1 %v2343_v17  ;;  %4202 = vpow2.f32 %v2338_v28 }
 0xf7c   :  { %v4199_v12 = vpop.eup %4198 }
 0xf7d   :  { %v2346_v59 = vsel %vm350_vm2, %v4199_v12, 0.0 }
 0xf80   :  { %v5254_v16 = vpop.eup %4200 }
 0xf81   :  { %v2349_v60 = vsel %vm350_vm2, %v5254_v16, 0.0 }
 0xf8b   :  { %4071 = vrot.lane.b32.xlu1 %v4070_v23, %s4235_s12  ;;  %v5257_v23 = vpop.eup %4202 }
 0xf8c   :  { %4076 = vrot.lane.b32.xlu0 %v4075_v38, %s4235_s12  ;;  %v2352_v8 = vsel %vm350_vm2, %v5257_v23, 0.0 }
 0xfab   :  { %2347 = vadd.xlane.f32.xlu0 %v2346_v59 }
 0xfaf   :  { %2350 = vadd.xlane.f32.xlu0 %v2349_v60  ;;  %2353 = vadd.xlane.f32.xlu1 %v2352_v8 }
 0xfc5   :  { %4081 = vrot.lane.b32.xlu0 %v4080_v18, %s4235_s12 }
 0xfc9   :  { %4086 = vrot.lane.b32.xlu0 %v4085_v31, %s4235_s12 }
 0xfcd   :  { %4091 = vrot.lane.b32.xlu0 %v5048_v11, %s4237_s2 }
 0xfd1   :  { %4096 = vrot.lane.b32.xlu0 %v5032_v6, %s4237_s2 }
0x1003   :  { %v2342_v38 = vpop.xlane.xlu0 %2341 }
0x1004   :  { %4204 = vrcp.f32 %v2342_v38 }
0x1007   :  { %v2345_v58 = vpop.xlane.xlu1 %2344  ;;  %v4077_v7 = vpop.permute.xlu0 %4076 }
0x1008   :  { %v4079_v5 = vunpack.i.h.bf16 %v4077_v7  ;;  %v4078_v22 = vunpack.i.l.bf16 %v4077_v7  ;;  %4206 = vrcp.f32 %v2345_v58 }
0x100a   :  { %v3942_v18 = vpack.c.bf16 %v4079_v5, %v4078_v22 }
0x100b   :  { %v4072_v29 = vpop.permute.xlu1 %4071 }
0x100c   :  { %v4074_v10 = vunpack.i.h.bf16 %v4072_v29  ;;  %v4073_v35 = vunpack.i.l.bf16 %v4072_v29 }
0x100e   :  { %v3939_v9 = vpack.c.bf16 %v4074_v10, %v4073_v35  ;;  %v4205_v44 = vpop.eup %4204 }
0x100f   :  { %v2360_v39 = vmul.f32 %v4205_v44, %v5238_v3 }
0x1010   :  { %3940 = vmatpush3.bf16.msra.mxu0 %v3939_v9 }
0x1011   :  { %3941 = vmatprep.subr.bf16.mxu0 %v4238_v26 }
0x1012   :  { %v4207_v2 = vpop.eup %4206 }
0x1013   :  { %v2361_v13 = vmul.f32 %v4207_v2, %v5242_v21 }
0x1014   :  { %3943 = vmatpush3.bf16.msra.mxu0 %v3942_v18 }
0x1015   :  { %3944 = vmatprep.subr.bf16.mxu0 %v4238_v26 }
0x1038   :  { %v2348_v11 = vpop.xlane.xlu0 %2347 }
0x1039   :  { %4208 = vrcp.f32 %v2348_v11 }
0x103c   :  { %v2351_v27 = vpop.xlane.xlu0 %2350  ;;  %v2354_v51 = vpop.xlane.xlu1 %2353 }
0x103d   :  { %4210 = vrcp.f32 %v2351_v27 }
0x103e   :  { %4212 = vrcp.f32 %v2354_v51 }
0x1040   :  { %v4082_v6 = vpop.permute.xlu0 %4081 }
0x1041   :  { %v4084_v25 = vunpack.i.h.bf16 %v4082_v6  ;;  %v4083_v31 = vunpack.i.l.bf16 %v4082_v6 }
0x1043   :  { %v3945_v0 = vpack.c.bf16 %v4084_v25, %v4083_v31  ;;  %v4209_v34 = vpop.eup %4208 }
0x1044   :  { %v4087_v4 = vpop.permute.xlu0 %4086  ;;  %v2362_v14 = vmul.f32 %v4209_v34, %v4199_v12 }
0x1045   :  { %v4089_v61 = vunpack.i.h.bf16 %v4087_v4  ;;  %v4088_v47 = vunpack.i.l.bf16 %v4087_v4  ;;  %3946 = vmatpush3.bf16.msra.mxu0 %v3945_v0 }
0x1046   :  { %3947 = vmatprep.subr.bf16.mxu0 %v4238_v26 }
0x1047   :  { %v3948_v33 = vpack.c.bf16 %v4089_v61, %v4088_v47  ;;  %v4211_v62 = vpop.eup %4210 }
0x1048   :  { %v4092_v24 = vpop.permute.xlu0 %4091  ;;  %v2363_v52 = vmul.f32 %v4211_v62, %v5254_v16  ;;  %v4213_v15 = vpop.eup %4212 }
0x1049   :  { %3949 = vmatpush3.bf16.msra.mxu0 %v3948_v33  ;;  %v4094_v20 = vunpack.i.h.bf16 %v4092_v24  ;;  %v4093_v40 = vunpack.i.l.bf16 %v4092_v24  ;;  %v2364_v55 = vmul.f32 %v4213_v15, %v5257_v23 }
0x104a   :  { %3950 = vmatprep.subr.bf16.mxu0 %v4238_v26 }
0x104b   :  { %v3951_v3 = vpack.c.bf16 %v4094_v20, %v4093_v40 }
0x104c   :  { %3711 = vmatmul.mubr.msk.f32.vlgmr.msra.gmra.mrb[52].mxu0 %vm350_vm2, %v2360_v39  ;;  %v4097_v30 = vpop.permute.xlu0 %4096 }
0x104d   :  { %3713 = vmatprep.mubr.msk.f32.mxu0 %vm4239_vm3, %v4240_v37  ;;  %3952 = vmatpush3.bf16.msra.mxu0 %v3951_v3  ;;  %v4099_v21 = vunpack.i.h.bf16 %v4097_v30  ;;  %v4098_v17 = vunpack.i.l.bf16 %v4097_v30 }
0x104e   :  { %3953 = vmatprep.subr.bf16.mxu0 %v4238_v26 }
0x104f   :  { %v3954_v45 = vpack.c.bf16 %v4099_v21, %v4098_v17 }
0x1050   :  { %3714 = vmatmul.mubr.msk.f32.gmra.mrb[54].mxu0 %vm350_vm2, %v2361_v13 }
0x1051   :  { %3716 = vmatprep.mubr.msk.f32.mxu0 %vm4239_vm3, %v4240_v37  ;;  %3955 = vmatpush3.bf16.msra.mxu0 %v3954_v45 }
0x1052   :  { %3962 = vmatprep.subr.bf16.mxu0 %v4238_v26 }
0x1054   :  { %3717 = vmatmul.mubr.msk.f32.gmra.mrb[56].mxu0 %vm350_vm2, %v2362_v14 }
0x1055   :  { %3719 = vmatprep.mubr.msk.f32.mxu0 %vm4239_vm3, %v4240_v37 }
0x1058   :  { %3720 = vmatmul.mubr.msk.f32.gmra.mrb[58].mxu0 %vm350_vm2, %v2363_v52 }
0x1059   :  { %3722 = vmatprep.mubr.msk.f32.mxu0 %vm4239_vm3, %v4240_v37 }
0x105c   :  { %3723 = vmatmul.mubr.msk.f32.gmra.mrb[60].mxu0 %vm350_vm2, %v2364_v55 }
0x105d   :  { %3733 = vmatprep.mubr.msk.f32.mxu0 %vm4239_vm3, %v4240_v37 }
0x111f   :  { %v2470_v42 = vpop.f32.mrb[52].mxu0 }
0x1120   :  { %v3712_v54 = vpop.f32.mrb[53].mxu0  ;;  %3734 = vmatmul.mubr.msk.f32.vlgmr.msra.gmra.mrb[62].mxu0 %vm51_vm0, %v2470_v42  ;;  %v3158_v42 = vld [vmem:[%s5497_s6 + $0x20] sm:$0xff] }
0x1121   :  { %3736 = vmatprep.mubr.msk.f32.mxu0 %vm4239_vm3, %v4240_v37  ;;  %v3159_v54 = vld [vmem:[%s5497_s6 + $0x28] sm:$0xff] }
0x1123   :  { %v2475_v63 = vpop.f32.mrb[54].mxu0 }
0x1124   :  { %v3715_v56 = vpop.f32.mrb[55].mxu0  ;;  %3737 = vmatmul.mubr.msk.f32.gmra.mrb[64].mxu0 %vm51_vm0, %v2475_v63  ;;  %v3957_v63 = vpack.c.bf16 %v3159_v54, %v3158_v42 }
0x1125   :  { %3739 = vmatprep.mubr.msk.f32.mxu0 %vm4239_vm3, %v4240_v37  ;;  %v3160_v56 = vld [vmem:[%s5497_s6 + $0x30] sm:$0xff] }
0x1126   :  { %3958 = vmatpush3.bf16.msra.mxu1 %v3957_v63 }
0x1127   :  { %v2480_v28 = vpop.f32.mrb[56].mxu0  ;;  %3959 = vmatprep.subr.bf16.mxu1 %v4238_v26 }
0x1128   :  { %v3718_v12 = vpop.f32.mrb[57].mxu0  ;;  %3740 = vmatmul.mubr.msk.f32.gmra.mrb[66].mxu0 %vm51_vm0, %v2480_v28  ;;  %v3161_v28 = vld [vmem:[%s5497_s6 + $0x38] sm:$0xff] }
0x1129   :  { %3742 = vmatprep.mubr.msk.f32.mxu0 %vm4239_vm3, %v4240_v37  ;;  %v3960_v12 = vpack.c.bf16 %v3161_v28, %v3160_v56 }
0x112b   :  { %v2485_v16 = vpop.f32.mrb[58].mxu0  ;;  %3961 = vmatpush3.bf16.msra.mxu1 %v3960_v12 }
0x112c   :  { %v3721_v59 = vpop.f32.mrb[59].mxu0  ;;  %3743 = vmatmul.mubr.msk.f32.gmra.mrb[68].mxu0 %vm51_vm0, %v2485_v16  ;;  %v3167_v16 = vld [vmem:[%s5498_s7 + $0x40] sm:$0xff] }
0x112d   :  { %3745 = vmatprep.mubr.msk.f32.mxu0 %vm4239_vm3, %v4240_v37  ;;  %v3168_v59 = vld [vmem:[%s5498_s7 + $0x48] sm:$0xff] }
0x112f   :  { %v2490_v23 = vpop.f32.mrb[60].mxu0 }
0x1130   :  { %v3724_v60 = vpop.f32.mrb[61].mxu0  ;;  %3746 = vmatmul.mubr.msk.f32.gmra.mrb[70].mxu0 %vm51_vm0, %v2490_v23  ;;  %v3169_v23 = vld [vmem:[%s5498_s7 + $0x50] sm:$0xff] }
0x1131   :  { %3787 = vmatprep.mubr.msk.f32.mxu0 %vm4239_vm3, %v4240_v37  ;;  %v3963_v60 = vpack.c.bf16 %v3168_v59, %v3167_v16 }
0x1133   :  { %3964 = vmatpush3.bf16.msra.mxu0 %v3963_v60 }
0x1134   :  { %3965 = vmatprep.subr.bf16.mxu0 %v4238_v26 }
0x11f3   :  { %v2587_v8 = vpop.f32.mrb[62].mxu0 }
0x11f4   :  { %v2611_v38 = vadd.f32 %v2587_v8, %v5125_v19  ;;  %v3735_v58 = vpop.f32.mrb[63].mxu0  ;;  %v3170_v8 = vld [vmem:[%s5498_s7 + $0x58] sm:$0xff] }
0x11f5   :  { %v3171_v58 = vld [vmem:[%s5498_s7 + $0x60] sm:$0xff] }
0x11f6   :  { %v2616_v7 = vsel %vm51_vm0, %v2611_v38, 0.0 }
0x11f7   :  { %2617 = vadd.xlane.f32.xlu0 %v2616_v7  ;;  %v2592_v29 = vpop.f32.mrb[64].mxu0  ;;  %v3172_v7 = vld [vmem:[%s5498_s7 + $0x68] sm:$0xff] }
0x11f8   :  { %v2612_v10 = vadd.f32 %v2592_v29, %v5132_v43  ;;  %v3738_v35 = vpop.f32.mrb[65].mxu0  ;;  %v3969_v29 = vpack.c.bf16 %v3172_v7, %v3171_v58 }
0x11fa   :  { %v2619_v5 = vsel %vm51_vm0, %v2612_v10, 0.0 }
0x11fb   :  { %2620 = vadd.xlane.f32.xlu1 %v2619_v5  ;;  %v2597_v22 = vpop.f32.mrb[66].mxu0 }
0x11fc   :  { %v2613_v9 = vadd.f32 %v2597_v22, %v5139_v1  ;;  %v3741_v18 = vpop.f32.mrb[67].mxu0 }
0x11fe   :  { %v2622_v11 = vsel %vm51_vm0, %v2613_v9, 0.0 }
0x11ff   :  { %2623 = vadd.xlane.f32.xlu1 %v2622_v11  ;;  %v2602_v27 = vpop.f32.mrb[68].mxu0 }
0x1200   :  { %v2614_v19 = vadd.f32 %v2602_v27, %v5146_v57  ;;  %v3744_v6 = vpop.f32.mrb[69].mxu0 }
0x1202   :  { %v2625_v25 = vsel %vm51_vm0, %v2614_v19, 0.0 }
0x1203   :  { %2626 = vadd.xlane.f32.xlu1 %v2625_v25  ;;  %v2607_v31 = vpop.f32.mrb[70].mxu0 }
0x1204   :  { %v2615_v43 = vadd.f32 %v2607_v31, %v5153_v32  ;;  %v3747_v0 = vpop.f32.mrb[71].mxu0 }
0x1206   :  { %v2628_v4 = vsel %vm51_vm0, %v2615_v43, 0.0 }
0x1207   :  { %2629 = vadd.xlane.f32.xlu1 %v2628_v4 }
0x1284   :  { %v2618_v61 = vpop.xlane.xlu0 %2617 }
0x1285   :  { %v2631_v1 = vmul.f32 0.03125, %v2618_v61 }
0x1287   :  { %v5325_v47 = vsub.f32 %v2611_v38, %v2631_v1  ;;  %v3966_v38 = vpack.c.bf16 %v3170_v8, %v3169_v23 }
0x1288   :  { %v2621_v44 = vpop.xlane.xlu1 %2620 }
0x1289   :  { %v2632_v33 = vmul.f32 0.03125, %v2621_v44  ;;  %v2641_v57 = vmul.f32 %v5325_v47, %v5325_v47  ;;  %3967 = vmatpush3.bf16.msra.mxu0 %v3966_v38 }
0x128a   :  { %3968 = vmatprep.subr.bf16.mxu0 %v4238_v26 }
0x128b   :  { %v5329_v39 = vsub.f32 %v2612_v10, %v2632_v33  ;;  %v2646_v51 = vsel %vm51_vm0, %v2641_v57, 0.0 }
0x128c   :  { %v2624_v2 = vpop.xlane.xlu1 %2623  ;;  %2647 = vadd.xlane.f32.xlu1 %v2646_v51 }
0x128d   :  { %v2633_v32 = vmul.f32 0.03125, %v2624_v2  ;;  %v2642_v13 = vmul.f32 %v5329_v39, %v5329_v39  ;;  %3970 = vmatpush3.bf16.msra.mxu0 %v3969_v29 }
0x128e   :  { %3971 = vmatprep.subr.bf16.mxu0 %v4238_v26 }
0x128f   :  { %v5334_v34 = vsub.f32 %v2613_v9, %v2633_v32  ;;  %v2649_v24 = vsel %vm51_vm0, %v2642_v13, 0.0 }
0x1290   :  { %v2627_v20 = vpop.xlane.xlu1 %2626  ;;  %2650 = vadd.xlane.f32.xlu1 %v2649_v24 }
0x1291   :  { %v2634_v40 = vmul.f32 0.03125, %v2627_v20  ;;  %v2643_v14 = vmul.f32 %v5334_v34, %v5334_v34 }
0x1293   :  { %v5339_v62 = vsub.f32 %v2614_v19, %v2634_v40  ;;  %v2652_v3 = vsel %vm51_vm0, %v2643_v14, 0.0  ;;  %v5387_v19 = vld [vmem:[%s5499_s8 + $0x8] sm:$0x3f] }
0x1294   :  { %2653 = vadd.xlane.f32.xlu0 %v2652_v3  ;;  %v2630_v30 = vpop.xlane.xlu1 %2629  ;;  %v2684_v26 = vrot.slane %v5387_v19, %v852_v41  ;;  %v2693_v4 = vrot.slane %v5387_v19, %v864_v48 }
0x1295   :  { %v2635_v21 = vmul.f32 0.03125, %v2630_v30  ;;  %v2644_v17 = vmul.f32 %v5339_v62, %v5339_v62 }
0x1297   :  { %v5344_v52 = vsub.f32 %v2615_v43, %v2635_v21  ;;  %v2655_v15 = vsel %vm51_vm0, %v2644_v17, 0.0  ;;  %v3173_v17 = vld [vmem:[%s5498_s7 + $0x70] sm:$0xff] }
0x1298   :  { %2656 = vadd.xlane.f32.xlu1 %v2655_v15 }
0x1299   :  { %v2645_v45 = vmul.f32 %v5344_v52, %v5344_v52 }
0x129b   :  { %v2658_v55 = vsel %vm51_vm0, %v2645_v45, 0.0  ;;  %v2707_v45 = vrot.slane %v5387_v19, %v880_v49 }
0x129c   :  { %2659 = vadd.xlane.f32.xlu0 %v2658_v55 }
0x1319   :  { %v2648_v10 = vpop.xlane.xlu1 %2647 }
0x131a   :  { %v2661_v35 = vmul.f32 0.03125, %v2648_v10 }
0x131c   :  { %v2666_v5 = vadd.f32 1e-05, %v2661_v35 }
0x131d   :  { %v2651_v22 = vpop.xlane.xlu1 %2650 }
0x131e   :  { %4214 = vrsqrt.f32 %v2666_v5  ;;  %v2662_v9 = vmul.f32 0.03125, %v2651_v22  ;;  %v2830_v22 = vrot.slane %v5387_v19, %v1029_v50 }
0x1320   :  { %v2667_v18 = vadd.f32 1e-05, %v2662_v9 }
0x1321   :  { %v2654_v11 = vpop.xlane.xlu0 %2653 }
0x1322   :  { %4216 = vrsqrt.f32 %v2667_v18  ;;  %v2663_v27 = vmul.f32 0.03125, %v2654_v11 }
0x1324   :  { %v2668_v6 = vadd.f32 1e-05, %v2663_v27 }
0x1325   :  { %v2657_v25 = vpop.xlane.xlu1 %2656 }
0x1326   :  { %4218 = vrsqrt.f32 %v2668_v6  ;;  %v2664_v31 = vmul.f32 0.03125, %v2657_v25 }
0x1328   :  { %v4215_v43 = vpop.eup %4214  ;;  %v2669_v0 = vadd.f32 1e-05, %v2664_v31 }
0x1329   :  { %v2676_v61 = vmul.f32 %v4215_v43, %v5325_v47  ;;  %v2660_v1 = vpop.xlane.xlu0 %2659 }
0x132a   :  { %4220 = vrsqrt.f32 %v2669_v0  ;;  %v2665_v44 = vmul.f32 0.03125, %v2660_v1 }
0x132b   :  { %v2685_v33 = vmul.f32 %v2684_v26, %v2676_v61 }
0x132c   :  { %v4217_v57 = vpop.eup %4216  ;;  %v2670_v51 = vadd.f32 1e-05, %v2665_v44 }
0x132d   :  { %v5396_v2 = vadd.f32 %v2693_v4, %v2685_v33  ;;  %v2677_v32 = vmul.f32 %v4217_v57, %v5329_v39 }
0x132e   :  { %4222 = vrsqrt.f32 %v2670_v51 }
0x132f   :  { %3757 = vmatmul.mubr.msk.f32.vlgmr.msra.gmra.mrb[64].mxu1 %vm51_vm0, %v5396_v2  ;;  %v2686_v41 = vmul.f32 %v2684_v26, %v2677_v32 }
0x1330   :  { %v4219_v13 = vpop.eup %4218  ;;  %3759 = vmatprep.mubr.msk.f32.mxu1 %vm4239_vm3, %v4240_v37 }
0x1331   :  { %v5403_v48 = vadd.f32 %v2693_v4, %v2686_v41  ;;  %v2678_v47 = vmul.f32 %v4219_v13, %v5334_v34 }
0x1333   :  { %3760 = vmatmul.mubr.msk.f32.gmra.mrb[66].mxu1 %vm51_vm0, %v5403_v48  ;;  %v2687_v24 = vmul.f32 %v2684_v26, %v2678_v47 }
0x1334   :  { %v4221_v20 = vpop.eup %4220  ;;  %3762 = vmatprep.mubr.msk.f32.mxu1 %vm4239_vm3, %v4240_v37 }
0x1335   :  { %v5410_v39 = vadd.f32 %v2693_v4, %v2687_v24  ;;  %v2679_v40 = vmul.f32 %v4221_v20, %v5339_v62 }
0x1337   :  { %3763 = vmatmul.mubr.msk.f32.gmra.mrb[68].mxu1 %vm51_vm0, %v5410_v39  ;;  %v2688_v14 = vmul.f32 %v2684_v26, %v2679_v40 }
0x1338   :  { %v4223_v3 = vpop.eup %4222  ;;  %3765 = vmatprep.mubr.msk.f32.mxu1 %vm4239_vm3, %v4240_v37 }
0x1339   :  { %v5417_v34 = vadd.f32 %v2693_v4, %v2688_v14  ;;  %v2680_v30 = vmul.f32 %v4223_v3, %v5344_v52  ;;  %v3174_v52 = vld [vmem:[%s5498_s7 + $0x78] sm:$0xff] }
0x133a   :  { %v3972_v15 = vpack.c.bf16 %v3174_v52, %v3173_v17 }
0x133b   :  { %3766 = vmatmul.mubr.msk.f32.gmra.mrb[70].mxu1 %vm51_vm0, %v5417_v34  ;;  %v2689_v21 = vmul.f32 %v2684_v26, %v2680_v30 }
0x133c   :  { %3768 = vmatprep.mubr.msk.f32.mxu1 %vm4239_vm3, %v4240_v37  ;;  %3973 = vmatpush3.bf16.msra.mxu0 %v3972_v15 }
0x133d   :  { %v5424_v62 = vadd.f32 %v2693_v4, %v2689_v21 }
0x133f   :  { %3769 = vmatmul.mubr.msk.f32.gmra.mrb[72].mxu1 %vm51_vm0, %v5424_v62 }
0x1402   :  { %v2789_v55 = vpop.f32.mrb[64].mxu1 }
0x1403   :  { %v2790_v42 = vadd.f32 %v2789_v55, %v2707_v45  ;;  %v3758_v54 = vpop.f32.mrb[65].mxu1 }
0x1405   :  { %v2813_v63 = vmax.f32 %v2790_v42, 0.0 }
0x1406   :  { %v2794_v56 = vpop.f32.mrb[66].mxu1 }
0x1407   :  { %v2795_v28 = vadd.f32 %v2794_v56, %v2707_v45  ;;  %v3761_v12 = vpop.f32.mrb[67].mxu1  ;;  %3788 = vmatmul.mubr.msk.f32.vlgmr.msra.gmra.mrb[72].mxu0 %vm350_vm2, %v2813_v63 }
0x1408   :  { %3790 = vmatprep.mubr.msk.f32.mxu0 %vm4239_vm3, %v4240_v37 }
0x1409   :  { %v2814_v16 = vmax.f32 %v2795_v28, 0.0 }
0x140a   :  { %v2799_v59 = vpop.f32.mrb[68].mxu1 }
0x140b   :  { %v2800_v23 = vadd.f32 %v2799_v59, %v2707_v45  ;;  %v3764_v60 = vpop.f32.mrb[69].mxu1  ;;  %3791 = vmatmul.mubr.msk.f32.gmra.mrb[74].mxu0 %vm350_vm2, %v2814_v16 }
0x140c   :  { %3793 = vmatprep.mubr.msk.f32.mxu0 %vm4239_vm3, %v4240_v37 }
0x140d   :  { %v2815_v49 = vmax.f32 %v2800_v23, 0.0 }
0x140e   :  { %v2804_v8 = vpop.f32.mrb[70].mxu1 }
0x140f   :  { %v2805_v38 = vadd.f32 %v2804_v8, %v2707_v45  ;;  %v3767_v58 = vpop.f32.mrb[71].mxu1  ;;  %3794 = vmatmul.mubr.msk.f32.gmra.mrb[76].mxu0 %vm350_vm2, %v2815_v49 }
0x1410   :  { %3796 = vmatprep.mubr.msk.f32.mxu0 %vm4239_vm3, %v4240_v37 }
0x1411   :  { %v2816_v7 = vmax.f32 %v2805_v38, 0.0 }
0x1412   :  { %v2809_v29 = vpop.f32.mrb[72].mxu1 }
0x1413   :  { %v2810_v10 = vadd.f32 %v2809_v29, %v2707_v45  ;;  %v3770_v35 = vpop.f32.mrb[73].mxu1  ;;  %3797 = vmatmul.mubr.msk.f32.gmra.mrb[78].mxu0 %vm350_vm2, %v2816_v7 }
0x1414   :  { %3799 = vmatprep.mubr.msk.f32.mxu0 %vm4239_vm3, %v4240_v37 }
0x1415   :  { %v2817_v5 = vmax.f32 %v2810_v10, 0.0 }
0x1417   :  { %3800 = vmatmul.mubr.msk.f32.gmra.mrb[80].mxu0 %vm350_vm2, %v2817_v5 }
0x14da   :  { %v2912_v9 = vpop.f32.mrb[72].mxu0 }
0x14db   :  { %v2913_v18 = vadd.f32 %v2912_v9, %v2830_v22  ;;  %v3789_v11 = vpop.f32.mrb[73].mxu0 }
0x14dd   :  { %v2936_v27 = vadd.f32 %v2913_v18, %v5396_v2  ;;  %v3009_v18 = vrot.slane %v5387_v19, %v1274_v46 }
0x14de   :  { %v2917_v6 = vpop.f32.mrb[74].mxu0 }
0x14df   :  { %v2918_v25 = vadd.f32 %v2917_v6, %v2830_v22  ;;  %v3792_v31 = vpop.f32.mrb[75].mxu0  ;;  %v2941_v26 = vsel %vm51_vm0, %v2936_v27, 0.0  ;;  %v3018_v6 = vrot.slane %v5387_v19, %v1286_v53 }
0x14e0   :  { %2942 = vadd.xlane.f32.xlu1 %v2941_v26 }
0x14e1   :  { %v2937_v37 = vadd.f32 %v2918_v25, %v5403_v48 }
0x14e2   :  { %v2922_v43 = vpop.f32.mrb[76].mxu0 }
0x14e3   :  { %v2923_v0 = vadd.f32 %v2922_v43, %v2830_v22  ;;  %v3795_v4 = vpop.f32.mrb[77].mxu0  ;;  %v2944_v61 = vsel %vm51_vm0, %v2937_v37, 0.0 }
0x14e4   :  { %2945 = vadd.xlane.f32.xlu0 %v2944_v61 }
0x14e5   :  { %v2938_v50 = vadd.f32 %v2923_v0, %v5410_v39 }
0x14e6   :  { %v2927_v1 = vpop.f32.mrb[78].mxu0 }
0x14e7   :  { %v2928_v44 = vadd.f32 %v2927_v1, %v2830_v22  ;;  %v3798_v33 = vpop.f32.mrb[79].mxu0  ;;  %v2947_v57 = vsel %vm51_vm0, %v2938_v50, 0.0 }
0x14e8   :  { %2948 = vadd.xlane.f32.xlu1 %v2947_v57 }
0x14e9   :  { %v2939_v51 = vadd.f32 %v2928_v44, %v5417_v34 }
0x14ea   :  { %v2932_v2 = vpop.f32.mrb[80].mxu0 }
0x14eb   :  { %v2933_v32 = vadd.f32 %v2932_v2, %v2830_v22  ;;  %v3801_v41 = vpop.f32.mrb[81].mxu0  ;;  %v2950_v13 = vsel %vm51_vm0, %v2939_v51, 0.0 }
0x14ec   :  { %2951 = vadd.xlane.f32.xlu0 %v2950_v13 }
0x14ed   :  { %v2940_v48 = vadd.f32 %v2933_v32, %v5424_v62 }
0x14ef   :  { %v2953_v47 = vsel %vm51_vm0, %v2940_v48, 0.0 }
0x14f0   :  { %2954 = vadd.xlane.f32.xlu1 %v2953_v47 }
0x156d   :  { %v2943_v24 = vpop.xlane.xlu1 %2942 }
0x156e   :  { %v2956_v20 = vmul.f32 0.03125, %v2943_v24 }
0x1570   :  { %v2961_v39 = vsub.f32 %v2936_v27, %v2956_v20 }
0x1571   :  { %v2946_v40 = vpop.xlane.xlu0 %2945 }
0x1572   :  { %v2957_v14 = vmul.f32 0.03125, %v2946_v40  ;;  %v2966_v3 = vmul.f32 %v2961_v39, %v2961_v39 }
0x1574   :  { %v2962_v30 = vsub.f32 %v2937_v37, %v2957_v14  ;;  %v2971_v34 = vsel %vm51_vm0, %v2966_v3, 0.0 }
0x1575   :  { %v2949_v21 = vpop.xlane.xlu1 %2948  ;;  %2972 = vadd.xlane.f32.xlu0 %v2971_v34 }
0x1576   :  { %v2958_v17 = vmul.f32 0.03125, %v2949_v21  ;;  %v2967_v52 = vmul.f32 %v2962_v30, %v2962_v30 }
0x1578   :  { %v2963_v15 = vsub.f32 %v2938_v50, %v2958_v17  ;;  %v2974_v45 = vsel %vm51_vm0, %v2967_v52, 0.0 }
0x1579   :  { %v2952_v62 = vpop.xlane.xlu0 %2951  ;;  %2975 = vadd.xlane.f32.xlu1 %v2974_v45 }
0x157a   :  { %v2959_v55 = vmul.f32 0.03125, %v2952_v62  ;;  %v2968_v42 = vmul.f32 %v2963_v15, %v2963_v15 }
0x157c   :  { %v2964_v54 = vsub.f32 %v2939_v51, %v2959_v55  ;;  %v2977_v63 = vsel %vm51_vm0, %v2968_v42, 0.0 }
0x157d   :  { %2978 = vadd.xlane.f32.xlu0 %v2977_v63  ;;  %v2955_v56 = vpop.xlane.xlu1 %2954 }
0x157e   :  { %v2960_v28 = vmul.f32 0.03125, %v2955_v56  ;;  %v2969_v12 = vmul.f32 %v2964_v54, %v2964_v54 }
0x1580   :  { %v2965_v16 = vsub.f32 %v2940_v48, %v2960_v28  ;;  %v2980_v59 = vsel %vm51_vm0, %v2969_v12, 0.0 }
0x1581   :  { %2981 = vadd.xlane.f32.xlu1 %v2980_v59 }
0x1582   :  { %v2970_v23 = vmul.f32 %v2965_v16, %v2965_v16 }
0x1584   :  { %v2983_v60 = vsel %vm51_vm0, %v2970_v23, 0.0 }
0x1585   :  { %2984 = vadd.xlane.f32.xlu0 %v2983_v60 }
0x1602   :  { %v2973_v49 = vpop.xlane.xlu0 %2972 }
0x1603   :  { %v2986_v8 = vmul.f32 0.03125, %v2973_v49 }
0x1605   :  { %v2991_v38 = vadd.f32 1e-05, %v2986_v8 }
0x1606   :  { %v2976_v58 = vpop.xlane.xlu1 %2975 }
0x1607   :  { %4224 = vrsqrt.f32 %v2991_v38  ;;  %v2987_v7 = vmul.f32 0.03125, %v2976_v58 }
0x1609   :  { %v2992_v29 = vadd.f32 1e-05, %v2987_v7 }
0x160a   :  { %v2979_v10 = vpop.xlane.xlu0 %2978 }
0x160b   :  { %4226 = vrsqrt.f32 %v2992_v29  ;;  %v2988_v35 = vmul.f32 0.03125, %v2979_v10 }
0x160d   :  { %v2993_v5 = vadd.f32 1e-05, %v2988_v35 }
0x160e   :  { %v2982_v22 = vpop.xlane.xlu1 %2981 }
0x160f   :  { %4228 = vrsqrt.f32 %v2993_v5  ;;  %v2989_v9 = vmul.f32 0.03125, %v2982_v22 }
0x1611   :  { %v4225_v11 = vpop.eup %4224  ;;  %v2994_v27 = vadd.f32 1e-05, %v2989_v9 }
0x1612   :  { %v3001_v25 = vmul.f32 %v4225_v11, %v2961_v39  ;;  %v2985_v31 = vpop.xlane.xlu0 %2984 }
0x1613   :  { %4230 = vrsqrt.f32 %v2994_v27  ;;  %v2990_v26 = vmul.f32 0.03125, %v2985_v31 }
0x1614   :  { %v3010_v37 = vmul.f32 %v3009_v18, %v3001_v25 }
0x1615   :  { %v4227_v43 = vpop.eup %4226  ;;  %v2995_v0 = vadd.f32 1e-05, %v2990_v26 }
0x1616   :  { %v3019_v4 = vadd.f32 %v3018_v6, %v3010_v37  ;;  %v3002_v61 = vmul.f32 %v4227_v43, %v2962_v30 }
0x1617   :  { %4232 = vrsqrt.f32 %v2995_v0 }
0x1618   :  { %3024 = vst.msk [vmem:[%s5503_s9] sm:$0xff] %vm51_vm0, %v3019_v4  ;;  %v3011_v46 = vmul.f32 %v3009_v18, %v3002_v61 }
0x1619   :  { %v4229_v50 = vpop.eup %4228 }
0x161a   :  { %v3020_v36 = vadd.f32 %v3018_v6, %v3011_v46  ;;  %v3003_v1 = vmul.f32 %v4229_v50, %v2963_v15 }
0x161c   :  { %3025 = vst.msk [vmem:[%s5503_s9 + $0x8] sm:$0xff] %vm51_vm0, %v3020_v36  ;;  %v3012_v53 = vmul.f32 %v3009_v18, %v3003_v1 }
0x161d   :  { %v4231_v19 = vpop.eup %4230 }
0x161e   :  { %v3021_v44 = vadd.f32 %v3018_v6, %v3012_v53  ;;  %v3004_v33 = vmul.f32 %v4231_v19, %v2964_v54 }
0x1620   :  { %3026 = vst.msk [vmem:[%s5503_s9 + $0x10] sm:$0xff] %vm51_vm0, %v3021_v44  ;;  %v3013_v57 = vmul.f32 %v3009_v18, %v3004_v33 }
0x1621   :  { %v4233_v51 = vpop.eup %4232 }
0x1622   :  { %v3022_v2 = vadd.f32 %v3018_v6, %v3013_v57  ;;  %v3005_v32 = vmul.f32 %v4233_v51, %v2965_v16 }
0x1624   :  { %3027 = vst.msk [vmem:[%s5503_s9 + $0x18] sm:$0xff] %vm51_vm0, %v3022_v2  ;;  %v3014_v41 = vmul.f32 %v3009_v18, %v3005_v32 }
0x1626   :  { %v3023_v13 = vadd.f32 %v3018_v6, %v3014_v41 }
0x1628   :  { %3028 = vst.msk [vmem:[%s5503_s9 + $0x20] sm:$0xff] %vm51_vm0, %v3023_v13 }

</bundles_post_ra>
